<compile_context>
chip_gen: v7x
topology: tpu7x:2x2x1
jax: 0.10.0
libtpu: 0.0.40
codegen_flags: <defaults>
</compile_context>

<pallas_src>
import numpy as np
import jax
import jax.numpy as jnp
from jax import lax
from jax.experimental import pallas as pl
from jax.experimental.pallas import tpu as pltpu

_BN_EPS = 1e-5


# ---------------------------------------------------------------------------
# Static structure of the block
# ---------------------------------------------------------------------------
def _level_plan(num_columns):
    depth = 2 ** (num_columns - 1)
    return [[j for j in range(num_columns) if (i + 1) % (2 ** j) == 0]
            for i in range(depth)]


def _conv_list(num_columns, in_channels, out_channels):
    convs = []
    for i, active in enumerate(_level_plan(num_columns)):
        for j in active:
            cin = in_channels if (i + 1) == 2 ** j else out_channels
            convs.append((i, j, cin))
    return convs


# ---------------------------------------------------------------------------
# Host-side parameter packing (BN + mean-join folds, banded weights, one operand each)
# ---------------------------------------------------------------------------
def _banded_conv_weight(w_hwio, w_sp, cout):
    """(3,3,cin,cout) HWIO kernel -> (3*(W+2)*cin, W*cout) banded matmul RHS.

    Row index = dy*(W+2)*cin + wp*cin + c   (lane-dense padded-row layout of the LHS)
    Col index = w*cout + o                  (lane-dense output layout)
    T[row, col] = K[dy, wp - w, c, o] when 0 <= wp - w <= 2, else 0.
    """
    cin = w_hwio.shape[2]
    k = np.asarray(w_hwio, np.float32)
    t = np.zeros((3, w_sp + 2, cin, w_sp, cout), np.float32)
    for w in range(w_sp):
        for dx in range(3):
            t[:, w + dx, :, w, :] = k[:, dx, :, :]
    return t.reshape(3 * (w_sp + 2) * cin, w_sp * cout)


def pack_fractal_block_params(params, num_columns, in_channels, out_channels, w_sp):
    plan = _level_plan(num_columns)
    w_blocks, b_rows = [], []
    for (i, j, cin) in _conv_list(num_columns, in_channels, out_channels):
        p = params[(i, j)]
        scale = np.asarray(p["gamma"], np.float32) / np.sqrt(
            np.asarray(p["var"], np.float32) + _BN_EPS)
        w = np.asarray(p["w"], np.float32) * scale.reshape(1, 1, 1, -1)   # fold BN scale
        bias = (np.asarray(p["beta"], np.float32)
                - np.asarray(p["mean"], np.float32) * scale)
        if (i + 1) != 2 ** j:
            # This conv consumes the (unscaled) sum produced by the mean-join at level
            # i - 2**j; fold that join's 1/k here instead of scaling the join itself.
            w = w * (1.0 / float(len(plan[i - 2 ** j])))
        w_blocks.append(_banded_conv_weight(w, w_sp, out_channels))
        b_rows.append(np.tile(bias, w_sp))          # lane layout w*Cout + o -> bias[o]
    w_packed = jnp.asarray(np.concatenate(w_blocks, axis=0)).astype(jnp.bfloat16)
    b_packed = jnp.asarray(np.stack(b_rows, axis=0).astype(np.float32))
    return w_packed, b_packed


# ---------------------------------------------------------------------------
# Whole-block fused kernel
# ---------------------------------------------------------------------------
def _make_block_kernel(num_columns, in_ch, out_ch, H, W, B):
    plan = _level_plan(num_columns)
    depth = len(plan)
    convs = _conv_list(num_columns, in_ch, out_ch)
    conv_index = {(i, j): idx for idx, (i, j, _) in enumerate(convs)}
    k_offsets, off = [], 0
    for (_, _, cin) in convs:
        k_offsets.append(off)
        off += 3 * (W + 2) * cin
    NL = W * out_ch                                  # output lane width (=128 in demo)

    def kernel(x_ref, w_ref, b_ref, o_ref, xpad_ref, *st_refs):
        # Re-zero padded scratches every grid step so the 1-pixel halo is always zero.
        # (Cannot zero only at program_id==0: with "parallel" semantics each core owns
        #  a disjoint set of grid steps and has its own scratch instance.)
        xpad_ref[...] = jnp.zeros_like(xpad_ref)
        for st in st_refs:
            st[...] = jnp.zeros_like(st)
        # Raw input into the interior of its padded, lane-dense scratch.
        xpad_ref[:, 1:H + 1, in_ch:(W + 1) * in_ch] = x_ref[...]

        def conv_bn_relu(load_rows, cin, k_off, c_idx):
            kdy = (W + 2) * cin
            acc = None
            for dy in range(3):                      # 3 accumulated MXU matmuls
                lhs = load_rows(dy).astype(jnp.bfloat16).reshape(B * H, kdy)
                rhs = w_ref[k_off + dy * kdy:k_off + (dy + 1) * kdy, :]
                part = jnp.dot(lhs, rhs, preferred_element_type=jnp.float32)
                acc = part if acc is None else acc + part
            y = jnp.maximum(acc + b_ref[c_idx:c_idx + 1, :], 0.0)   # f32, lane-dense
            return y.reshape(B, H, NL)

        for li, active in enumerate(plan):
            level_outs = []
            for j in active:
                idx = conv_index[(li, j)]
                cin = convs[idx][2]
                if (li + 1) == 2 ** j:               # first conv of this column: raw x
                    load = lambda dy: xpad_ref[:, dy:dy + H, :]
                else:                                # consumes this column's last join
                    load = lambda dy, jj=j: st_refs[jj][:, dy:dy + H, :]
                level_outs.append(conv_bn_relu(load, cin, k_offsets[idx], idx))
            joined = level_outs[0]
            for t in level_outs[1:]:
                joined = joined + t                  # unscaled sum; 1/k folded downstream
            if li == depth - 1:
                # Only the final join keeps its explicit 1/k (it feeds the output).
                o_ref[...] = (joined * (1.0 / float(len(level_outs)))).astype(o_ref.dtype)
            else:
                for j in active:
                    if li + 2 ** j < depth:          # only if a later conv reads it
                        st_refs[j][:, 1:H + 1, out_ch:(W + 1) * out_ch] = joined

    return kernel


def fractal_block_forward(x_nchw, params, num_columns, glob_num_columns=None, *,
                          images_per_step=None):
    """Inference-mode FractalBlock forward (NCHW in, NCHW out).

    glob_num_columns only affects training-mode drop-path and is ignored here.
    """
    del glob_num_columns
    N, Cin, H, W = x_nchw.shape
    Cout = params[(0, 0)]["gamma"].shape[0]
    if images_per_step is None:
        # Fold batch into the matmul M dim, but keep >= 2 grid steps for v7x megacore.
        images_per_step = N // 2 if (N >= 2 and N % 2 == 0) else N
    B = images_per_step
    assert N % B == 0, (N, B)

    w_packed, b_packed = pack_fractal_block_params(params, num_columns, Cin, Cout, W)
    n_convs, k_total = b_packed.shape[0], w_packed.shape[0]

    # Lane-dense layouts: (N, H, W*Cin) input, (N, H, W*Cout) output.
    x = jnp.transpose(x_nchw, (0, 2, 3, 1)).reshape(N, H, W * Cin)

    y = pl.pallas_call(
        _make_block_kernel(num_columns, Cin, Cout, H, W, B),
        out_shape=jax.ShapeDtypeStruct((N, H, W * Cout), jnp.float32),
        grid=(N // B,),
        in_specs=[
            pl.BlockSpec((B, H, W * Cin), lambda n: (n, 0, 0)),
            pl.BlockSpec((k_total, W * Cout), lambda n: (0, 0)),   # all weights: one DMA
            pl.BlockSpec((n_convs, W * Cout), lambda n: (0, 0)),   # all biases:  one DMA
        ],
        out_specs=pl.BlockSpec((B, H, W * Cout), lambda n: (n, 0, 0)),
        scratch_shapes=(
            [pltpu.VMEM((B, H + 2, (W + 2) * Cin), jnp.float32)] +
            [pltpu.VMEM((B, H + 2, (W + 2) * Cout), jnp.float32)
             for _ in range(num_columns)]),
        compiler_params=pltpu.CompilerParams(dimension_semantics=("parallel",)),
    )(x, w_packed, b_packed)

    return jnp.transpose(y.reshape(N, H, W, Cout), (0, 3, 1, 2))


# ---------------------------------------------------------------------------
# Deterministic synthetic parameters (raw conv + BN running stats)
# ---------------------------------------------------------------------------
def init_fractal_block_params(key, in_channels, out_channels, num_columns):
    params = {}
    for (i, j, cin) in _conv_list(num_columns, in_channels, out_channels):
        key, k1, k2, k3, k4, k5 = jax.random.split(key, 6)
        params[(i, j)] = dict(
            w=0.1 * jax.random.normal(k1, (3, 3, cin, out_channels), jnp.float32),
            gamma=1.0 + 0.1 * jax.random.normal(k2, (out_channels,), jnp.float32),
            beta=0.1 * jax.random.normal(k3, (out_channels,), jnp.float32),
            mean=0.1 * jax.random.normal(k4, (out_channels,), jnp.float32),
            var=jax.random.uniform(k5, (out_channels,), jnp.float32,
                                   minval=0.5, maxval=1.5),
        )
    return params


# ---------------------------------------------------------------------------
# Pure-JAX f32 reference (explicit BN, explicit mean-join) for the self-check
# ---------------------------------------------------------------------------
def _ref_forward(x_nchw, params, num_columns):
    x = jnp.transpose(x_nchw, (0, 2, 3, 1))
    outs = [x] * num_columns
    for i, active in enumerate(_level_plan(num_columns)):
        lo = []
        for j in active:
            p = params[(i, j)]
            y = lax.conv_general_dilated(
                outs[j], p["w"], (1, 1), ((1, 1), (1, 1)),
                dimension_numbers=("NHWC", "HWIO", "NHWC"),
                precision=lax.Precision.HIGHEST)
            s = p["gamma"] / jnp.sqrt(p["var"] + _BN_EPS)
            lo.append(jnp.maximum(y * s + (p["beta"] - p["mean"] * s), 0.0))
        joined = jnp.mean(jnp.stack(lo[::-1], 0), axis=0)
        for j in active:
            outs[j] = joined
    return jnp.transpose(outs[0], (0, 3, 1, 2))


if __name__ == "__main__":
    N, Cin, H, W = 4, 4, 16, 16        # N=4 -> 2 images per grid step, grid=(2,)
    Cout, num_columns = 8, 3           # depth=4 levels, 7 convs; W*Cout = 128 lanes

    key = jax.random.PRNGKey(0)
    kx, kp = jax.random.split(key)
    x = jax.random.normal(kx, (N, Cin, H, W), jnp.float32)      # NCHW (PyTorch layout)
    params = init_fractal_block_params(kp, Cin, Cout, num_columns)
    glob_num_columns = jnp.zeros((0,), jnp.int32)               # unused at inference

    out = fractal_block_forward(x, params, num_columns, glob_num_columns)
    out = jax.block_until_ready(out)
    assert out.shape == (N, Cout, H, W), out.shape

    ref = jax.block_until_ready(_ref_forward(x, params, num_columns))
    max_err = float(jnp.max(jnp.abs(out - ref)))
    # bf16 MXU operands vs an f32 (HIGHEST precision) reference across 4 chained
    # levels: expected worst-case ~1e-2..3e-2; structural bugs (tap order, scale
    # folds, bias tiling) produce errors >= ~2e-1.
    if max_err > 8e-2:
        raise AssertionError(f"Pallas vs reference mismatch: max abs err = {max_err}")
    print("KERNEL_OK")
</pallas_src>

<mosaic_0001>
module attributes {stable_mosaic.version = 11 : i64} {
  func.func @kernel(%arg0: i32, %arg1: memref<2x16x64xf32, #tpu.memory_space<vmem>>, %arg2: memref<2376x128xbf16, #tpu.memory_space<vmem>>, %arg3: memref<7x128xf32, #tpu.memory_space<vmem>>, %arg4: memref<2x16x128xf32, #tpu.memory_space<vmem>>, %arg5: memref<2x18x72xf32, #tpu.memory_space<vmem>>, %arg6: memref<2x18x144xf32, #tpu.memory_space<vmem>>, %arg7: memref<2x18x144xf32, #tpu.memory_space<vmem>>, %arg8: memref<2x18x144xf32, #tpu.memory_space<vmem>>) attributes {dimension_semantics = [#tpu.dimension_semantics<parallel>], iteration_bounds = array<i64: 2>, scalar_prefetch = 0 : i64, scratch_operands = 4 : i64, tpu.core_type = #tpu.core_type<tc>, window_params = [{transform_indices = @transform_0, window_bounds = array<i64: 2, 16, 64>}, {pipeline_mode = #tpu.pipeline_mode<synchronous>, transform_indices = @transform_1, window_bounds = array<i64: 2376, 128>}, {pipeline_mode = #tpu.pipeline_mode<synchronous>, transform_indices = @transform_2, window_bounds = array<i64: 7, 128>}, {transform_indices = @transform_3, window_bounds = array<i64: 2, 16, 128>}]} {
    %cst = arith.constant 0.000000e+00 : f32
    %0 = vector.broadcast %cst : f32 to vector<2x18x72xf32>
    %c0 = arith.constant 0 : index
    %c0_0 = arith.constant 0 : index
    %c0_1 = arith.constant 0 : index
    %1 = vector.load %arg5[%c0, %c0_0, %c0_1] : memref<2x18x72xf32, #tpu.memory_space<vmem>>, vector<2x18x72xf32>
    tpu.vector_store %arg5[%c0, %c0_0, %c0_1], %0 {strides = array<i32>} : memref<2x18x72xf32, #tpu.memory_space<vmem>>, vector<2x18x72xf32>,
    %cst_2 = arith.constant 0.000000e+00 : f32
    %2 = vector.broadcast %cst_2 : f32 to vector<2x18x144xf32>
    %c0_3 = arith.constant 0 : index
    %c0_4 = arith.constant 0 : index
    %c0_5 = arith.constant 0 : index
    %3 = vector.load %arg6[%c0_3, %c0_4, %c0_5] : memref<2x18x144xf32, #tpu.memory_space<vmem>>, vector<2x18x144xf32>
    tpu.vector_store %arg6[%c0_3, %c0_4, %c0_5], %2 {strides = array<i32>} : memref<2x18x144xf32, #tpu.memory_space<vmem>>, vector<2x18x144xf32>,
    %cst_6 = arith.constant 0.000000e+00 : f32
    %4 = vector.broadcast %cst_6 : f32 to vector<2x18x144xf32>
    %c0_7 = arith.constant 0 : index
    %c0_8 = arith.constant 0 : index
    %c0_9 = arith.constant 0 : index
    %5 = vector.load %arg7[%c0_7, %c0_8, %c0_9] : memref<2x18x144xf32, #tpu.memory_space<vmem>>, vector<2x18x144xf32>
    tpu.vector_store %arg7[%c0_7, %c0_8, %c0_9], %4 {strides = array<i32>} : memref<2x18x144xf32, #tpu.memory_space<vmem>>, vector<2x18x144xf32>,
    %cst_10 = arith.constant 0.000000e+00 : f32
    %6 = vector.broadcast %cst_10 : f32 to vector<2x18x144xf32>
    %c0_11 = arith.constant 0 : index
    %c0_12 = arith.constant 0 : index
    %c0_13 = arith.constant 0 : index
    %7 = vector.load %arg8[%c0_11, %c0_12, %c0_13] : memref<2x18x144xf32, #tpu.memory_space<vmem>>, vector<2x18x144xf32>
    tpu.vector_store %arg8[%c0_11, %c0_12, %c0_13], %6 {strides = array<i32>} : memref<2x18x144xf32, #tpu.memory_space<vmem>>, vector<2x18x144xf32>,
    %c0_14 = arith.constant 0 : index
    %c0_15 = arith.constant 0 : index
    %c0_16 = arith.constant 0 : index
    %8 = vector.load %arg1[%c0_14, %c0_15, %c0_16] : memref<2x16x64xf32, #tpu.memory_space<vmem>>, vector<2x16x64xf32>
    %c0_17 = arith.constant 0 : index
    %c1 = arith.constant 1 : index
    %c4 = arith.constant 4 : index
    %9 = vector.load %arg5[%c0_17, %c1, %c4] : memref<2x18x72xf32, #tpu.memory_space<vmem>>, vector<2x16x64xf32>
    tpu.vector_store %arg5[%c0_17, %c1, %c4], %8 {strides = array<i32>} : memref<2x18x72xf32, #tpu.memory_space<vmem>>, vector<2x16x64xf32>,
    %c0_18 = arith.constant 0 : index
    %c0_19 = arith.constant 0 : index
    %c0_20 = arith.constant 0 : index
    %10 = vector.load %arg5[%c0_18, %c0_19, %c0_20] : memref<2x18x72xf32, #tpu.memory_space<vmem>>, vector<2x16x72xf32>
    %11 = arith.truncf %10 : vector<2x16x72xf32> to vector<2x16x72xbf16>
    %12 = vector.shape_cast %11 : vector<2x16x72xbf16> to vector<32x72xbf16>
    %c0_21 = arith.constant 0 : index
    %c0_22 = arith.constant 0 : index
    %13 = vector.load %arg2[%c0_21, %c0_22] : memref<2376x128xbf16, #tpu.memory_space<vmem>>, vector<72x128xbf16>
    %cst_23 = arith.constant dense<0.000000e+00> : vector<32x128xf32>
    %14 = tpu.matmul %12, %13, %cst_23 {dimension_numbers = #tpu.dot_dimension_numbers<[1], [0], [0], [1], [0, 0, 1, 1], [], []>} : vector<32x72xbf16>, vector<72x128xbf16>, vector<32x128xf32> -> vector<32x128xf32>
    %c0_24 = arith.constant 0 : index
    %c1_25 = arith.constant 1 : index
    %c0_26 = arith.constant 0 : index
    %15 = vector.load %arg5[%c0_24, %c1_25, %c0_26] : memref<2x18x72xf32, #tpu.memory_space<vmem>>, vector<2x16x72xf32>
    %16 = arith.truncf %15 : vector<2x16x72xf32> to vector<2x16x72xbf16>
    %17 = vector.shape_cast %16 : vector<2x16x72xbf16> to vector<32x72xbf16>
    %c72 = arith.constant 72 : index
    %c0_27 = arith.constant 0 : index
    %18 = vector.load %arg2[%c72, %c0_27] : memref<2376x128xbf16, #tpu.memory_space<vmem>>, vector<72x128xbf16>
    %cst_28 = arith.constant dense<0.000000e+00> : vector<32x128xf32>
    %19 = tpu.matmul %17, %18, %cst_28 {dimension_numbers = #tpu.dot_dimension_numbers<[1], [0], [0], [1], [0, 0, 1, 1], [], []>} : vector<32x72xbf16>, vector<72x128xbf16>, vector<32x128xf32> -> vector<32x128xf32>
    %20 = arith.addf %14, %19 : vector<32x128xf32>
    %c0_29 = arith.constant 0 : index
    %c2 = arith.constant 2 : index
    %c0_30 = arith.constant 0 : index
    %21 = vector.load %arg5[%c0_29, %c2, %c0_30] : memref<2x18x72xf32, #tpu.memory_space<vmem>>, vector<2x16x72xf32>
    %22 = arith.truncf %21 : vector<2x16x72xf32> to vector<2x16x72xbf16>
    %23 = vector.shape_cast %22 : vector<2x16x72xbf16> to vector<32x72xbf16>
    %c144 = arith.constant 144 : index
    %c0_31 = arith.constant 0 : index
    %24 = vector.load %arg2[%c144, %c0_31] : memref<2376x128xbf16, #tpu.memory_space<vmem>>, vector<72x128xbf16>
    %cst_32 = arith.constant dense<0.000000e+00> : vector<32x128xf32>
    %25 = tpu.matmul %23, %24, %cst_32 {dimension_numbers = #tpu.dot_dimension_numbers<[1], [0], [0], [1], [0, 0, 1, 1], [], []>} : vector<32x72xbf16>, vector<72x128xbf16>, vector<32x128xf32> -> vector<32x128xf32>
    %26 = arith.addf %20, %25 : vector<32x128xf32>
    %c0_33 = arith.constant 0 : index
    %c0_34 = arith.constant 0 : index
    %27 = vector.load %arg3[%c0_33, %c0_34] : memref<7x128xf32, #tpu.memory_space<vmem>>, vector<1x128xf32>
    %28 = vector.broadcast %27 : vector<1x128xf32> to vector<32x128xf32>
    %29 = arith.addf %26, %28 : vector<32x128xf32>
    %cst_35 = arith.constant 0.000000e+00 : f32
    %30 = vector.broadcast %cst_35 : f32 to vector<32x128xf32>
    %31 = arith.maximumf %29, %30 : vector<32x128xf32>
    %32 = vector.shape_cast %31 : vector<32x128xf32> to vector<2x16x128xf32>
    %c0_36 = arith.constant 0 : index
    %c1_37 = arith.constant 1 : index
    %c8 = arith.constant 8 : index
    %33 = vector.load %arg6[%c0_36, %c1_37, %c8] : memref<2x18x144xf32, #tpu.memory_space<vmem>>, vector<2x16x128xf32>
    tpu.vector_store %arg6[%c0_36, %c1_37, %c8], %32 {strides = array<i32>} : memref<2x18x144xf32, #tpu.memory_space<vmem>>, vector<2x16x128xf32>,
    %c0_38 = arith.constant 0 : index
    %c0_39 = arith.constant 0 : index
    %c0_40 = arith.constant 0 : index
    %34 = vector.load %arg6[%c0_38, %c0_39, %c0_40] : memref<2x18x144xf32, #tpu.memory_space<vmem>>, vector<2x16x144xf32>
    %35 = arith.truncf %34 : vector<2x16x144xf32> to vector<2x16x144xbf16>
    %36 = vector.shape_cast %35 : vector<2x16x144xbf16> to vector<32x144xbf16>
    %c216 = arith.constant 216 : index
    %c0_41 = arith.constant 0 : index
    %37 = vector.load %arg2[%c216, %c0_41] : memref<2376x128xbf16, #tpu.memory_space<vmem>>, vector<144x128xbf16>
    %cst_42 = arith.constant dense<0.000000e+00> : vector<32x128xf32>
    %38 = tpu.matmul %36, %37, %cst_42 {dimension_numbers = #tpu.dot_dimension_numbers<[1], [0], [0], [1], [0, 0, 1, 1], [], []>} : vector<32x144xbf16>, vector<144x128xbf16>, vector<32x128xf32> -> vector<32x128xf32>
    %c0_43 = arith.constant 0 : index
    %c1_44 = arith.constant 1 : index
    %c0_45 = arith.constant 0 : index
    %39 = vector.load %arg6[%c0_43, %c1_44, %c0_45] : memref<2x18x144xf32, #tpu.memory_space<vmem>>, vector<2x16x144xf32>
    %40 = arith.truncf %39 : vector<2x16x144xf32> to vector<2x16x144xbf16>
    %41 = vector.shape_cast %40 : vector<2x16x144xbf16> to vector<32x144xbf16>
    %c360 = arith.constant 360 : index
    %c0_46 = arith.constant 0 : index
    %42 = vector.load %arg2[%c360, %c0_46] : memref<2376x128xbf16, #tpu.memory_space<vmem>>, vector<144x128xbf16>
    %cst_47 = arith.constant dense<0.000000e+00> : vector<32x128xf32>
    %43 = tpu.matmul %41, %42, %cst_47 {dimension_numbers = #tpu.dot_dimension_numbers<[1], [0], [0], [1], [0, 0, 1, 1], [], []>} : vector<32x144xbf16>, vector<144x128xbf16>, vector<32x128xf32> -> vector<32x128xf32>
    %44 = arith.addf %38, %43 : vector<32x128xf32>
    %c0_48 = arith.constant 0 : index
    %c2_49 = arith.constant 2 : index
    %c0_50 = arith.constant 0 : index
    %45 = vector.load %arg6[%c0_48, %c2_49, %c0_50] : memref<2x18x144xf32, #tpu.memory_space<vmem>>, vector<2x16x144xf32>
    %46 = arith.truncf %45 : vector<2x16x144xf32> to vector<2x16x144xbf16>
    %47 = vector.shape_cast %46 : vector<2x16x144xbf16> to vector<32x144xbf16>
    %c504 = arith.constant 504 : index
    %c0_51 = arith.constant 0 : index
    %48 = vector.load %arg2[%c504, %c0_51] : memref<2376x128xbf16, #tpu.memory_space<vmem>>, vector<144x128xbf16>
    %cst_52 = arith.constant dense<0.000000e+00> : vector<32x128xf32>
    %49 = tpu.matmul %47, %48, %cst_52 {dimension_numbers = #tpu.dot_dimension_numbers<[1], [0], [0], [1], [0, 0, 1, 1], [], []>} : vector<32x144xbf16>, vector<144x128xbf16>, vector<32x128xf32> -> vector<32x128xf32>
    %50 = arith.addf %44, %49 : vector<32x128xf32>
    %c1_53 = arith.constant 1 : index
    %c0_54 = arith.constant 0 : index
    %51 = vector.load %arg3[%c1_53, %c0_54] : memref<7x128xf32, #tpu.memory_space<vmem>>, vector<1x128xf32>
    %52 = vector.broadcast %51 : vector<1x128xf32> to vector<32x128xf32>
    %53 = arith.addf %50, %52 : vector<32x128xf32>
    %cst_55 = arith.constant 0.000000e+00 : f32
    %54 = vector.broadcast %cst_55 : f32 to vector<32x128xf32>
    %55 = arith.maximumf %53, %54 : vector<32x128xf32>
    %56 = vector.shape_cast %55 : vector<32x128xf32> to vector<2x16x128xf32>
    %c0_56 = arith.constant 0 : index
    %c0_57 = arith.constant 0 : index
    %c0_58 = arith.constant 0 : index
    %57 = vector.load %arg5[%c0_56, %c0_57, %c0_58] : memref<2x18x72xf32, #tpu.memory_space<vmem>>, vector<2x16x72xf32>
    %58 = arith.truncf %57 : vector<2x16x72xf32> to vector<2x16x72xbf16>
    %59 = vector.shape_cast %58 : vector<2x16x72xbf16> to vector<32x72xbf16>
    %c648 = arith.constant 648 : index
    %c0_59 = arith.constant 0 : index
    %60 = vector.load %arg2[%c648, %c0_59] : memref<2376x128xbf16, #tpu.memory_space<vmem>>, vector<72x128xbf16>
    %cst_60 = arith.constant dense<0.000000e+00> : vector<32x128xf32>
    %61 = tpu.matmul %59, %60, %cst_60 {dimension_numbers = #tpu.dot_dimension_numbers<[1], [0], [0], [1], [0, 0, 1, 1], [], []>} : vector<32x72xbf16>, vector<72x128xbf16>, vector<32x128xf32> -> vector<32x128xf32>
    %c0_61 = arith.constant 0 : index
    %c1_62 = arith.constant 1 : index
    %c0_63 = arith.constant 0 : index
    %62 = vector.load %arg5[%c0_61, %c1_62, %c0_63] : memref<2x18x72xf32, #tpu.memory_space<vmem>>, vector<2x16x72xf32>
    %63 = arith.truncf %62 : vector<2x16x72xf32> to vector<2x16x72xbf16>
    %64 = vector.shape_cast %63 : vector<2x16x72xbf16> to vector<32x72xbf16>
    %c720 = arith.constant 720 : index
    %c0_64 = arith.constant 0 : index
    %65 = vector.load %arg2[%c720, %c0_64] : memref<2376x128xbf16, #tpu.memory_space<vmem>>, vector<72x128xbf16>
    %cst_65 = arith.constant dense<0.000000e+00> : vector<32x128xf32>
    %66 = tpu.matmul %64, %65, %cst_65 {dimension_numbers = #tpu.dot_dimension_numbers<[1], [0], [0], [1], [0, 0, 1, 1], [], []>} : vector<32x72xbf16>, vector<72x128xbf16>, vector<32x128xf32> -> vector<32x128xf32>
    %67 = arith.addf %61, %66 : vector<32x128xf32>
    %c0_66 = arith.constant 0 : index
    %c2_67 = arith.constant 2 : index
    %c0_68 = arith.constant 0 : index
    %68 = vector.load %arg5[%c0_66, %c2_67, %c0_68] : memref<2x18x72xf32, #tpu.memory_space<vmem>>, vector<2x16x72xf32>
    %69 = arith.truncf %68 : vector<2x16x72xf32> to vector<2x16x72xbf16>
    %70 = vector.shape_cast %69 : vector<2x16x72xbf16> to vector<32x72xbf16>
    %c792 = arith.constant 792 : index
    %c0_69 = arith.constant 0 : index
    %71 = vector.load %arg2[%c792, %c0_69] : memref<2376x128xbf16, #tpu.memory_space<vmem>>, vector<72x128xbf16>
    %cst_70 = arith.constant dense<0.000000e+00> : vector<32x128xf32>
    %72 = tpu.matmul %70, %71, %cst_70 {dimension_numbers = #tpu.dot_dimension_numbers<[1], [0], [0], [1], [0, 0, 1, 1], [], []>} : vector<32x72xbf16>, vector<72x128xbf16>, vector<32x128xf32> -> vector<32x128xf32>
    %73 = arith.addf %67, %72 : vector<32x128xf32>
    %c2_71 = arith.constant 2 : index
    %c0_72 = arith.constant 0 : index
    %74 = vector.load %arg3[%c2_71, %c0_72] : memref<7x128xf32, #tpu.memory_space<vmem>>, vector<1x128xf32>
    %75 = vector.broadcast %74 : vector<1x128xf32> to vector<32x128xf32>
    %76 = arith.addf %73, %75 : vector<32x128xf32>
    %cst_73 = arith.constant 0.000000e+00 : f32
    %77 = vector.broadcast %cst_73 : f32 to vector<32x128xf32>
    %78 = arith.maximumf %76, %77 : vector<32x128xf32>
    %79 = vector.shape_cast %78 : vector<32x128xf32> to vector<2x16x128xf32>
    %80 = arith.addf %56, %79 : vector<2x16x128xf32>
    %c0_74 = arith.constant 0 : index
    %c1_75 = arith.constant 1 : index
    %c8_76 = arith.constant 8 : index
    %81 = vector.load %arg6[%c0_74, %c1_75, %c8_76] : memref<2x18x144xf32, #tpu.memory_space<vmem>>, vector<2x16x128xf32>
    tpu.vector_store %arg6[%c0_74, %c1_75, %c8_76], %80 {strides = array<i32>} : memref<2x18x144xf32, #tpu.memory_space<vmem>>, vector<2x16x128xf32>,
    %c0_77 = arith.constant 0 : index
    %c1_78 = arith.constant 1 : index
    %c8_79 = arith.constant 8 : index
    %82 = vector.load %arg7[%c0_77, %c1_78, %c8_79] : memref<2x18x144xf32, #tpu.memory_space<vmem>>, vector<2x16x128xf32>
    tpu.vector_store %arg7[%c0_77, %c1_78, %c8_79], %80 {strides = array<i32>} : memref<2x18x144xf32, #tpu.memory_space<vmem>>, vector<2x16x128xf32>,
    %c0_80 = arith.constant 0 : index
    %c0_81 = arith.constant 0 : index
    %c0_82 = arith.constant 0 : index
    %83 = vector.load %arg6[%c0_80, %c0_81, %c0_82] : memref<2x18x144xf32, #tpu.memory_space<vmem>>, vector<2x16x144xf32>
    %84 = arith.truncf %83 : vector<2x16x144xf32> to vector<2x16x144xbf16>
    %85 = vector.shape_cast %84 : vector<2x16x144xbf16> to vector<32x144xbf16>
    %c864 = arith.constant 864 : index
    %c0_83 = arith.constant 0 : index
    %86 = vector.load %arg2[%c864, %c0_83] : memref<2376x128xbf16, #tpu.memory_space<vmem>>, vector<144x128xbf16>
    %cst_84 = arith.constant dense<0.000000e+00> : vector<32x128xf32>
    %87 = tpu.matmul %85, %86, %cst_84 {dimension_numbers = #tpu.dot_dimension_numbers<[1], [0], [0], [1], [0, 0, 1, 1], [], []>} : vector<32x144xbf16>, vector<144x128xbf16>, vector<32x128xf32> -> vector<32x128xf32>
    %c0_85 = arith.constant 0 : index
    %c1_86 = arith.constant 1 : index
    %c0_87 = arith.constant 0 : index
    %88 = vector.load %arg6[%c0_85, %c1_86, %c0_87] : memref<2x18x144xf32, #tpu.memory_space<vmem>>, vector<2x16x144xf32>
    %89 = arith.truncf %88 : vector<2x16x144xf32> to vector<2x16x144xbf16>
    %90 = vector.shape_cast %89 : vector<2x16x144xbf16> to vector<32x144xbf16>
    %c1008 = arith.constant 1008 : index
    %c0_88 = arith.constant 0 : index
    %91 = vector.load %arg2[%c1008, %c0_88] : memref<2376x128xbf16, #tpu.memory_space<vmem>>, vector<144x128xbf16>
    %cst_89 = arith.constant dense<0.000000e+00> : vector<32x128xf32>
    %92 = tpu.matmul %90, %91, %cst_89 {dimension_numbers = #tpu.dot_dimension_numbers<[1], [0], [0], [1], [0, 0, 1, 1], [], []>} : vector<32x144xbf16>, vector<144x128xbf16>, vector<32x128xf32> -> vector<32x128xf32>
    %93 = arith.addf %87, %92 : vector<32x128xf32>
    %c0_90 = arith.constant 0 : index
    %c2_91 = arith.constant 2 : index
    %c0_92 = arith.constant 0 : index
    %94 = vector.load %arg6[%c0_90, %c2_91, %c0_92] : memref<2x18x144xf32, #tpu.memory_space<vmem>>, vector<2x16x144xf32>
    %95 = arith.truncf %94 : vector<2x16x144xf32> to vector<2x16x144xbf16>
    %96 = vector.shape_cast %95 : vector<2x16x144xbf16> to vector<32x144xbf16>
    %c1152 = arith.constant 1152 : index
    %c0_93 = arith.constant 0 : index
    %97 = vector.load %arg2[%c1152, %c0_93] : memref<2376x128xbf16, #tpu.memory_space<vmem>>, vector<144x128xbf16>
    %cst_94 = arith.constant dense<0.000000e+00> : vector<32x128xf32>
    %98 = tpu.matmul %96, %97, %cst_94 {dimension_numbers = #tpu.dot_dimension_numbers<[1], [0], [0], [1], [0, 0, 1, 1], [], []>} : vector<32x144xbf16>, vector<144x128xbf16>, vector<32x128xf32> -> vector<32x128xf32>
    %99 = arith.addf %93, %98 : vector<32x128xf32>
    %c3 = arith.constant 3 : index
    %c0_95 = arith.constant 0 : index
    %100 = vector.load %arg3[%c3, %c0_95] : memref<7x128xf32, #tpu.memory_space<vmem>>, vector<1x128xf32>
    %101 = vector.broadcast %100 : vector<1x128xf32> to vector<32x128xf32>
    %102 = arith.addf %99, %101 : vector<32x128xf32>
    %cst_96 = arith.constant 0.000000e+00 : f32
    %103 = vector.broadcast %cst_96 : f32 to vector<32x128xf32>
    %104 = arith.maximumf %102, %103 : vector<32x128xf32>
    %105 = vector.shape_cast %104 : vector<32x128xf32> to vector<2x16x128xf32>
    %c0_97 = arith.constant 0 : index
    %c1_98 = arith.constant 1 : index
    %c8_99 = arith.constant 8 : index
    %106 = vector.load %arg6[%c0_97, %c1_98, %c8_99] : memref<2x18x144xf32, #tpu.memory_space<vmem>>, vector<2x16x128xf32>
    tpu.vector_store %arg6[%c0_97, %c1_98, %c8_99], %105 {strides = array<i32>} : memref<2x18x144xf32, #tpu.memory_space<vmem>>, vector<2x16x128xf32>,
    %c0_100 = arith.constant 0 : index
    %c0_101 = arith.constant 0 : index
    %c0_102 = arith.constant 0 : index
    %107 = vector.load %arg6[%c0_100, %c0_101, %c0_102] : memref<2x18x144xf32, #tpu.memory_space<vmem>>, vector<2x16x144xf32>
    %108 = arith.truncf %107 : vector<2x16x144xf32> to vector<2x16x144xbf16>
    %109 = vector.shape_cast %108 : vector<2x16x144xbf16> to vector<32x144xbf16>
    %c1296 = arith.constant 1296 : index
    %c0_103 = arith.constant 0 : index
    %110 = vector.load %arg2[%c1296, %c0_103] : memref<2376x128xbf16, #tpu.memory_space<vmem>>, vector<144x128xbf16>
    %cst_104 = arith.constant dense<0.000000e+00> : vector<32x128xf32>
    %111 = tpu.matmul %109, %110, %cst_104 {dimension_numbers = #tpu.dot_dimension_numbers<[1], [0], [0], [1], [0, 0, 1, 1], [], []>} : vector<32x144xbf16>, vector<144x128xbf16>, vector<32x128xf32> -> vector<32x128xf32>
    %c0_105 = arith.constant 0 : index
    %c1_106 = arith.constant 1 : index
    %c0_107 = arith.constant 0 : index
    %112 = vector.load %arg6[%c0_105, %c1_106, %c0_107] : memref<2x18x144xf32, #tpu.memory_space<vmem>>, vector<2x16x144xf32>
    %113 = arith.truncf %112 : vector<2x16x144xf32> to vector<2x16x144xbf16>
    %114 = vector.shape_cast %113 : vector<2x16x144xbf16> to vector<32x144xbf16>
    %c1440 = arith.constant 1440 : index
    %c0_108 = arith.constant 0 : index
    %115 = vector.load %arg2[%c1440, %c0_108] : memref<2376x128xbf16, #tpu.memory_space<vmem>>, vector<144x128xbf16>
    %cst_109 = arith.constant dense<0.000000e+00> : vector<32x128xf32>
    %116 = tpu.matmul %114, %115, %cst_109 {dimension_numbers = #tpu.dot_dimension_numbers<[1], [0], [0], [1], [0, 0, 1, 1], [], []>} : vector<32x144xbf16>, vector<144x128xbf16>, vector<32x128xf32> -> vector<32x128xf32>
    %117 = arith.addf %111, %116 : vector<32x128xf32>
    %c0_110 = arith.constant 0 : index
    %c2_111 = arith.constant 2 : index
    %c0_112 = arith.constant 0 : index
    %118 = vector.load %arg6[%c0_110, %c2_111, %c0_112] : memref<2x18x144xf32, #tpu.memory_space<vmem>>, vector<2x16x144xf32>
    %119 = arith.truncf %118 : vector<2x16x144xf32> to vector<2x16x144xbf16>
    %120 = vector.shape_cast %119 : vector<2x16x144xbf16> to vector<32x144xbf16>
    %c1584 = arith.constant 1584 : index
    %c0_113 = arith.constant 0 : index
    %121 = vector.load %arg2[%c1584, %c0_113] : memref<2376x128xbf16, #tpu.memory_space<vmem>>, vector<144x128xbf16>
    %cst_114 = arith.constant dense<0.000000e+00> : vector<32x128xf32>
    %122 = tpu.matmul %120, %121, %cst_114 {dimension_numbers = #tpu.dot_dimension_numbers<[1], [0], [0], [1], [0, 0, 1, 1], [], []>} : vector<32x144xbf16>, vector<144x128xbf16>, vector<32x128xf32> -> vector<32x128xf32>
    %123 = arith.addf %117, %122 : vector<32x128xf32>
    %c4_115 = arith.constant 4 : index
    %c0_116 = arith.constant 0 : index
    %124 = vector.load %arg3[%c4_115, %c0_116] : memref<7x128xf32, #tpu.memory_space<vmem>>, vector<1x128xf32>
    %125 = vector.broadcast %124 : vector<1x128xf32> to vector<32x128xf32>
    %126 = arith.addf %123, %125 : vector<32x128xf32>
    %cst_117 = arith.constant 0.000000e+00 : f32
    %127 = vector.broadcast %cst_117 : f32 to vector<32x128xf32>
    %128 = arith.maximumf %126, %127 : vector<32x128xf32>
    %129 = vector.shape_cast %128 : vector<32x128xf32> to vector<2x16x128xf32>
    %c0_118 = arith.constant 0 : index
    %c0_119 = arith.constant 0 : index
    %c0_120 = arith.constant 0 : index
    %130 = vector.load %arg7[%c0_118, %c0_119, %c0_120] : memref<2x18x144xf32, #tpu.memory_space<vmem>>, vector<2x16x144xf32>
    %131 = arith.truncf %130 : vector<2x16x144xf32> to vector<2x16x144xbf16>
    %132 = vector.shape_cast %131 : vector<2x16x144xbf16> to vector<32x144xbf16>
    %c1728 = arith.constant 1728 : index
    %c0_121 = arith.constant 0 : index
    %133 = vector.load %arg2[%c1728, %c0_121] : memref<2376x128xbf16, #tpu.memory_space<vmem>>, vector<144x128xbf16>
    %cst_122 = arith.constant dense<0.000000e+00> : vector<32x128xf32>
    %134 = tpu.matmul %132, %133, %cst_122 {dimension_numbers = #tpu.dot_dimension_numbers<[1], [0], [0], [1], [0, 0, 1, 1], [], []>} : vector<32x144xbf16>, vector<144x128xbf16>, vector<32x128xf32> -> vector<32x128xf32>
    %c0_123 = arith.constant 0 : index
    %c1_124 = arith.constant 1 : index
    %c0_125 = arith.constant 0 : index
    %135 = vector.load %arg7[%c0_123, %c1_124, %c0_125] : memref<2x18x144xf32, #tpu.memory_space<vmem>>, vector<2x16x144xf32>
    %136 = arith.truncf %135 : vector<2x16x144xf32> to vector<2x16x144xbf16>
    %137 = vector.shape_cast %136 : vector<2x16x144xbf16> to vector<32x144xbf16>
    %c1872 = arith.constant 1872 : index
    %c0_126 = arith.constant 0 : index
    %138 = vector.load %arg2[%c1872, %c0_126] : memref<2376x128xbf16, #tpu.memory_space<vmem>>, vector<144x128xbf16>
    %cst_127 = arith.constant dense<0.000000e+00> : vector<32x128xf32>
    %139 = tpu.matmul %137, %138, %cst_127 {dimension_numbers = #tpu.dot_dimension_numbers<[1], [0], [0], [1], [0, 0, 1, 1], [], []>} : vector<32x144xbf16>, vector<144x128xbf16>, vector<32x128xf32> -> vector<32x128xf32>
    %140 = arith.addf %134, %139 : vector<32x128xf32>
    %c0_128 = arith.constant 0 : index
    %c2_129 = arith.constant 2 : index
    %c0_130 = arith.constant 0 : index
    %141 = vector.load %arg7[%c0_128, %c2_129, %c0_130] : memref<2x18x144xf32, #tpu.memory_space<vmem>>, vector<2x16x144xf32>
    %142 = arith.truncf %141 : vector<2x16x144xf32> to vector<2x16x144xbf16>
    %143 = vector.shape_cast %142 : vector<2x16x144xbf16> to vector<32x144xbf16>
    %c2016 = arith.constant 2016 : index
    %c0_131 = arith.constant 0 : index
    %144 = vector.load %arg2[%c2016, %c0_131] : memref<2376x128xbf16, #tpu.memory_space<vmem>>, vector<144x128xbf16>
    %cst_132 = arith.constant dense<0.000000e+00> : vector<32x128xf32>
    %145 = tpu.matmul %143, %144, %cst_132 {dimension_numbers = #tpu.dot_dimension_numbers<[1], [0], [0], [1], [0, 0, 1, 1], [], []>} : vector<32x144xbf16>, vector<144x128xbf16>, vector<32x128xf32> -> vector<32x128xf32>
    %146 = arith.addf %140, %145 : vector<32x128xf32>
    %c5 = arith.constant 5 : index
    %c0_133 = arith.constant 0 : index
    %147 = vector.load %arg3[%c5, %c0_133] : memref<7x128xf32, #tpu.memory_space<vmem>>, vector<1x128xf32>
    %148 = vector.broadcast %147 : vector<1x128xf32> to vector<32x128xf32>
    %149 = arith.addf %146, %148 : vector<32x128xf32>
    %cst_134 = arith.constant 0.000000e+00 : f32
    %150 = vector.broadcast %cst_134 : f32 to vector<32x128xf32>
    %151 = arith.maximumf %149, %150 : vector<32x128xf32>
    %152 = vector.shape_cast %151 : vector<32x128xf32> to vector<2x16x128xf32>
    %c0_135 = arith.constant 0 : index
    %c0_136 = arith.constant 0 : index
    %c0_137 = arith.constant 0 : index
    %153 = vector.load %arg5[%c0_135, %c0_136, %c0_137] : memref<2x18x72xf32, #tpu.memory_space<vmem>>, vector<2x16x72xf32>
    %154 = arith.truncf %153 : vector<2x16x72xf32> to vector<2x16x72xbf16>
    %155 = vector.shape_cast %154 : vector<2x16x72xbf16> to vector<32x72xbf16>
    %c2160 = arith.constant 2160 : index
    %c0_138 = arith.constant 0 : index
    %156 = vector.load %arg2[%c2160, %c0_138] : memref<2376x128xbf16, #tpu.memory_space<vmem>>, vector<72x128xbf16>
    %cst_139 = arith.constant dense<0.000000e+00> : vector<32x128xf32>
    %157 = tpu.matmul %155, %156, %cst_139 {dimension_numbers = #tpu.dot_dimension_numbers<[1], [0], [0], [1], [0, 0, 1, 1], [], []>} : vector<32x72xbf16>, vector<72x128xbf16>, vector<32x128xf32> -> vector<32x128xf32>
    %c0_140 = arith.constant 0 : index
    %c1_141 = arith.constant 1 : index
    %c0_142 = arith.constant 0 : index
    %158 = vector.load %arg5[%c0_140, %c1_141, %c0_142] : memref<2x18x72xf32, #tpu.memory_space<vmem>>, vector<2x16x72xf32>
    %159 = arith.truncf %158 : vector<2x16x72xf32> to vector<2x16x72xbf16>
    %160 = vector.shape_cast %159 : vector<2x16x72xbf16> to vector<32x72xbf16>
    %c2232 = arith.constant 2232 : index
    %c0_143 = arith.constant 0 : index
    %161 = vector.load %arg2[%c2232, %c0_143] : memref<2376x128xbf16, #tpu.memory_space<vmem>>, vector<72x128xbf16>
    %cst_144 = arith.constant dense<0.000000e+00> : vector<32x128xf32>
    %162 = tpu.matmul %160, %161, %cst_144 {dimension_numbers = #tpu.dot_dimension_numbers<[1], [0], [0], [1], [0, 0, 1, 1], [], []>} : vector<32x72xbf16>, vector<72x128xbf16>, vector<32x128xf32> -> vector<32x128xf32>
    %163 = arith.addf %157, %162 : vector<32x128xf32>
    %c0_145 = arith.constant 0 : index
    %c2_146 = arith.constant 2 : index
    %c0_147 = arith.constant 0 : index
    %164 = vector.load %arg5[%c0_145, %c2_146, %c0_147] : memref<2x18x72xf32, #tpu.memory_space<vmem>>, vector<2x16x72xf32>
    %165 = arith.truncf %164 : vector<2x16x72xf32> to vector<2x16x72xbf16>
    %166 = vector.shape_cast %165 : vector<2x16x72xbf16> to vector<32x72xbf16>
    %c2304 = arith.constant 2304 : index
    %c0_148 = arith.constant 0 : index
    %167 = vector.load %arg2[%c2304, %c0_148] : memref<2376x128xbf16, #tpu.memory_space<vmem>>, vector<72x128xbf16>
    %cst_149 = arith.constant dense<0.000000e+00> : vector<32x128xf32>
    %168 = tpu.matmul %166, %167, %cst_149 {dimension_numbers = #tpu.dot_dimension_numbers<[1], [0], [0], [1], [0, 0, 1, 1], [], []>} : vector<32x72xbf16>, vector<72x128xbf16>, vector<32x128xf32> -> vector<32x128xf32>
    %169 = arith.addf %163, %168 : vector<32x128xf32>
    %c6 = arith.constant 6 : index
    %c0_150 = arith.constant 0 : index
    %170 = vector.load %arg3[%c6, %c0_150] : memref<7x128xf32, #tpu.memory_space<vmem>>, vector<1x128xf32>
    %171 = vector.broadcast %170 : vector<1x128xf32> to vector<32x128xf32>
    %172 = arith.addf %169, %171 : vector<32x128xf32>
    %cst_151 = arith.constant 0.000000e+00 : f32
    %173 = vector.broadcast %cst_151 : f32 to vector<32x128xf32>
    %174 = arith.maximumf %172, %173 : vector<32x128xf32>
    %175 = vector.shape_cast %174 : vector<32x128xf32> to vector<2x16x128xf32>
    %176 = arith.addf %129, %152 : vector<2x16x128xf32>
    %177 = arith.addf %176, %175 : vector<2x16x128xf32>
    %cst_152 = arith.constant 0.333333343 : f32
    %178 = vector.broadcast %cst_152 : f32 to vector<2x16x128xf32>
    %179 = arith.mulf %177, %178 : vector<2x16x128xf32>
    %c0_153 = arith.constant 0 : index
    %c0_154 = arith.constant 0 : index
    %c0_155 = arith.constant 0 : index
    %180 = vector.load %arg4[%c0_153, %c0_154, %c0_155] : memref<2x16x128xf32, #tpu.memory_space<vmem>>, vector<2x16x128xf32>
    tpu.vector_store %arg4[%c0_153, %c0_154, %c0_155], %179 {strides = array<i32>} : memref<2x16x128xf32, #tpu.memory_space<vmem>>, vector<2x16x128xf32>,
    return
  }
  func.func @transform_0(%arg0: i32) -> (i32, i32, i32) {
    %c0_i32 = arith.constant 0 : i32
    %c0_i32_0 = arith.constant 0 : i32
    %c0_i32_1 = arith.constant 0 : i32
    return %arg0, %c0_i32, %c0_i32_0 : i32, i32, i32
  }
  func.func @transform_1(%arg0: i32) -> (i32, i32) {
    %c0_i32 = arith.constant 0 : i32
    %c0_i32_0 = arith.constant 0 : i32
    %c0_i32_1 = arith.constant 0 : i32
    return %c0_i32, %c0_i32_0 : i32, i32
  }
  func.func @transform_2(%arg0: i32) -> (i32, i32) {
    %c0_i32 = arith.constant 0 : i32
    %c0_i32_0 = arith.constant 0 : i32
    %c0_i32_1 = arith.constant 0 : i32
    return %c0_i32, %c0_i32_0 : i32, i32
  }
  func.func @transform_3(%arg0: i32) -> (i32, i32, i32) {
    %c0_i32 = arith.constant 0 : i32
    %c0_i32_0 = arith.constant 0 : i32
    %c0_i32_1 = arith.constant 0 : i32
    return %arg0, %c0_i32, %c0_i32_0 : i32, i32, i32
  }
}

</mosaic_0001>

<bundles_post_ra>
// kernel: tpu_custom_call.1
= control target key start
LH: loop header
LB: loop body
LE: loop exit
PB: predicated region body
PF: predicated region fallthrough
CT: control target
= control target key end

     0   :  { %8 = vsyncpa [#allocation7], 0  ;;  %s5098_s0 = inlined_call_operand.hbm [shape: f32[4,16,64], index: 0, kind: input, shape index: {}]   ;;  %s5099_s1 = inlined_call_operand.hbm [shape: bf16[2376,128], index: 1, kind: input, shape index: {}]   ;;  %s5100_s2 = inlined_call_operand.hbm [shape: f32[7,128], index: 2, kind: input, shape index: {}]   ;;  %s5101_s3 = inlined_call_operand.hbm [shape: f32[4,16,128], index: 3, kind: output, shape index: {}]  }
   0x1   :  { %10 = vsyncpa [#allocation7 + $0x1], 0 }
   0x2   :  { %11 = vsyncpa [#allocation10], 0 }
   0x3   :  { %12 = vsyncpa [#allocation8], 0 }
   0x4   :  { %14 = vsyncpa [#allocation8 + $0x1], 0  ;;  %s4435_s12 = smov 0   ;;  %s4437_s13 = smov 0  }
   0x5   :  { %s4439_s14 = smov 0   ;;  %s4441_s15 = smov 0  }
   0x6 LB: > { %s4456_s16 = sadd.s32 4294967295, %s4400_s15   ;;  %s3567_s17 = sadd.s32 4294967294, %s4400_s15   ;;  %s4400_s15 = sphi %s4441_s15, %s5121_s15   ;;  %s4396_s14 = sphi %s4439_s14, %s5120_s14   ;;  %s4392_s13 = sphi %s4437_s13, %s5119_s13   ;;  %s4388_s12 = sphi %s4435_s12, %s5118_s12  }
   0x7   : > { %p40_p0 = scmp.ne.s32.totalorder %s4392_s13, %s4388_s12  ;;  %p5102_p1 = scmp.eq.s32.totalorder %s4456_s16, 0 }
   0x8   : > { %p112_p3 = scmp.eq.s32.totalorder %s3567_s17, 1  ;;  %p3568_p5 = scmp.ge.s32.totalorder %s4400_s15, 1 }
   0x9   : > { %p4465_p4 = por %p5102_p1, %p40_p0  ;;  %p119_p7 = scmp.lt.s32.totalorder %s4400_s15, 3 }
   0xa   : > { %p4470_p6 = por %p112_p3, %p40_p0  ;;  %s4402_s21 = smov [#allocation9]  }
   0xb   : > { %s5105_s18 = scalar_select %p4465_p4, 1, 0 }
   0xc   : > { %s5106_s19 = scalar_select %p4470_p6, 1, 0 }
   0xd   : > { %p4475_p8 = pnand %p3568_p5, %p119_p7  ;;  %s131_s22 = sshll.u32 %s4402_s21, 4  ;;  %s4479_s22 = int_to_ptr.vmem [resolvable:$true] %s131_s22 }
   0xe   : > { %s4403_s24 = smov [#allocation11]   ;;  %s4244_s28 = scalar_lea.hbm %s5099_s1, 19008 }
   0xf   : > { %p4027_p9 = pneg %p4475_p8  ;;  %s145_s25 = sshll.u32 %s4403_s24, 4  ;;  %s4490_s25 = int_to_ptr.vmem [resolvable:$true] %s145_s25 }
  0x10   : > { %p4245_p12 = scmp.ne.s32.totalorder %s5099_s1, %s4244_s28  ;;  %p4251_p5 = scmp.lt.u32.totalorder %s4244_s28, %s5099_s1 }
  0x11   : > { %p4486_p11 = pnand %p4027_p9, %p5102_p1 }
  0x13   : > { %p4246_p13 = pneg %p4486_p11 }
  0x15   : > { %p4247_p0 = pnand %p4246_p13, %p4245_p12 }
  0x17   : > { %p4248_p3 = pneg %p4247_p0 }
  0x19   : > { %p4253_p7 = pnand %p4251_p5, %p4248_p3 }
  0x1b   : > { %4256 = shalt.err (!%p4253_p7)
}
  0x1c   : > { %s4257_s6 = scalar_lea.vmem %s4479_s22, 19008  ;;  %p4265_p2 = scmp.lt.s32.totalorder %s4479_s22, %s4479_s22 }
  0x1d   : > { %p4258_p9 = scmp.ne.s32.totalorder %s4479_s22, %s4257_s6  ;;  %p4266_p12 = scmp.lt.s32.totalorder %s4257_s6, %s4257_s6 }
  0x1f   : > { %p4260_p10 = pnand %p4258_p9, %p4246_p13  ;;  %p4267_p0 = por %p4266_p12, %p4265_p2 }
  0x21   : > { %p4261_p1 = pneg %p4260_p10 }
  0x23   : > { %p4268_p6 = pnand %p4267_p0, %p4261_p1 }
  0x25   : > { %4271 = shalt.err (!%p4268_p6)
}
  0x26   : > { %s4404_s7 = smov 64   ;;  %s4405_s8 = smov 4  }
  0x27   : > { %4030 = dma.hbm_to_vmem [thread:$0]  (!%p4486_p11), %s5099_s1, 19008, %s4479_s22, [#allocation10], %s4404_s7, %s4404_s7, %s4405_s8  }
  0x28   : > { %s4272_s21 = scalar_lea.hbm %s5100_s2, 128 }
  0x29   : > { %p4273_p2 = scmp.ne.s32.totalorder %s5100_s2, %s4272_s21  ;;  %p4279_p10 = scmp.lt.u32.totalorder %s4272_s21, %s5100_s2 }
  0x2b   : > { %p4275_p1 = pnand %p4273_p2, %p4246_p13 }
  0x2d   : > { %p4276_p6 = pneg %p4275_p1 }
  0x2f   : > { %p4281_p3 = pnand %p4279_p10, %p4276_p6 }
  0x31   : > { %4284 = shalt.err (!%p4281_p3)
}
  0x32   : > { %s4285_s22 = scalar_lea.vmem %s4490_s25, 128  ;;  %p4293_p12 = scmp.lt.s32.totalorder %s4490_s25, %s4490_s25 }
  0x33   : > { %p4286_p5 = scmp.ne.s32.totalorder %s4490_s25, %s4285_s22  ;;  %p4294_p0 = scmp.lt.s32.totalorder %s4285_s22, %s4285_s22 }
  0x35   : > { %p4288_p7 = pnand %p4286_p5, %p4246_p13  ;;  %p4295_p2 = por %p4294_p0, %p4293_p12 }
  0x37   : > { %p4289_p9 = pneg %p4288_p7 }
  0x39   : > { %p4296_p1 = pnand %p4295_p2, %p4289_p9 }
  0x3b   : > { %4299 = shalt.err (!%p4296_p1)
}
  0x3c   : > { %4033 = dma.hbm_to_vmem [thread:$0]  (!%p4486_p11), %s5100_s2, 128, %s4490_s25, [#allocation10]  }
  0x3d   : > { %s4545_s4 = sadd.s32 1, %s4400_s15   ;;  %s27_s23 = sadd.s32 1, %s4396_s14 }
  0x3e   : > { %s24_s5 = ssub.s32 %s4400_s15, %s4545_s4  ;;  %p34_p13 = scmp.ne.s32.totalorder %s4396_s14, %s4392_s13 }
  0x3f   : > { %p25_p6 = scmp.eq.s32.totalorder %s24_s5, 0  ;;  %p35_p10 = scmp.eq.s32.totalorder %s4400_s15, 0 }
  0x40   : > { %p5109_p3 = scmp.eq.s32.totalorder %s4456_s16, 1  ;;  %p4044_p7 = scmp.lt.s32.totalorder %s4400_s15, 2 }
  0x41   : > { %s4561_s7 = scalar_select %p25_p6, %s4396_s14, %s27_s23  }
  0x42   : > { %p4555_p5 = por %p5109_p3, %p34_p13  ;;  %p36_p9 = por %p35_p10, %p34_p13 }
  0x43   : > { %s156_s8 = sand.u32 1, %s4396_s14   ;;  %s3790_s25 = sshll.u32 %s4400_s15, 9 }
  0x44   : > { %s5110_s6 = scalar_select %p4555_p5, 1, 0 }
  0x45   : > { %s3572_s9 = sshll.u32 %s156_s8, 5  ;;  %s4568_s17 = scalar_lea.hbm %s5098_s0, %s3790_s25 }
  0x46   : > { %s160_s21 = scalar_lea.vmem [#allocation6], %s3572_s9  ;;  %p4572_p11 = pnand %p4044_p7, %p36_p9 }
  0x47   : > { %s168_s24 = sshll.u32 %s160_s21, 4  ;;  %s4576_s27 = scalar_lea.sflag [#allocation7], %s156_s8  ;;  %s4570_s24 = int_to_ptr.vmem [resolvable:$true] %s168_s24 }
  0x48   : > { %s4300_s28 = scalar_lea.hbm %s4568_s17, 512  ;;  %p4302_p0 = pneg %p4572_p11 }
  0x49   : > { %p4301_p12 = scmp.ne.s32.totalorder %s4568_s17, %s4300_s28  ;;  %s4305_s30 = scalar_lea.hbm %s5098_s0, 1024 }
  0x4a   : > { %p4306_p13 = scmp.lt.u32.totalorder %s4568_s17, %s5098_s0  ;;  %p4307_p6 = scmp.lt.u32.totalorder %s4305_s30, %s4300_s28 }
  0x4b   : > { %p4303_p2 = pnand %p4302_p0, %p4301_p12  ;;  %p4309_p3 = scmp.lt.u32.totalorder %s4300_s28, %s4568_s17 }
  0x4c   : > { %p4308_p10 = por %p4307_p6, %p4306_p13 }
  0x4d   : > { %p4304_p1 = pneg %p4303_p2 }
  0x4e   : > { %p4310_p7 = por %p4309_p3, %p4308_p10 }
  0x50   : > { %p4311_p9 = pnand %p4310_p7, %p4304_p1 }
  0x52   : > { %4314 = shalt.err (!%p4311_p9)
}
  0x53   : > { %s4315_s8 = scalar_lea.vmem %s4570_s24, 512  ;;  %s4406_s9 = smov [#allocation6]  }
  0x54   : > { %p4316_p12 = scmp.ne.s32.totalorder %s4570_s24, %s4315_s8  ;;  %s4320_s25 = sshll.u32 %s4406_s9, 4  ;;  %s4321_s25 = int_to_ptr.vmem [resolvable:$false] %s4320_s25 }
  0x55   : > { %s4322_s10 = scalar_lea.vmem %s4321_s25, 1024  ;;  %p4323_p4 = scmp.lt.s32.totalorder %s4570_s24, %s4321_s25 }
  0x56   : > { %p4318_p2 = pnand %p4316_p12, %p4302_p0  ;;  %p4324_p13 = scmp.lt.s32.totalorder %s4322_s10, %s4315_s8 }
  0x58   : > { %p4319_p5 = pneg %p4318_p2  ;;  %p4325_p6 = por %p4324_p13, %p4323_p4 }
  0x5a   : > { %p4326_p10 = pnand %p4325_p6, %p4319_p5 }
  0x5c   : > { %4329 = shalt.err (!%p4326_p10)
}
  0x5d   : > { %s4407_s11 = smov 128   ;;  %s4408_s21 = smov 8  }
  0x5e   : > { %4037 = dma.hbm_to_vmem [thread:$0]  (!%p4572_p11), %s4568_s17, 512, %s4570_s24, %s4576_s27, %s4407_s11, %s4407_s11, %s4408_s21  }
  0x5f   : > { %180 = sbr.rel (%p4475_p8) target bundleno = 1839 (0x72f), region = 32  ;;  %s4607_s28 = sand.u32 (!%p4475_p8), 1, %s4392_s13  }
  0x60   : > { %s3577_s22 = sshll.u32 (!%p4475_p8), %s4607_s28, 5  ;;  %s183_s29 = scalar_lea.sflag (!%p4475_p8), [#allocation7], %s4607_s28 }
  0x61   : > { %s4613_s30 = scalar_lea.vmem (!%p4475_p8), [#allocation6], %s3577_s22  ;;  %p5112_p4 = scmp.ne.s32.totalorder (!%p4475_p8), %s5105_s18, 0 }
  0x66   : > { %4375 = dma.done.wait (%p5112_p4), %s183_s29, 512  }
  0x67   : > { %4377 = vsyncadd (%p5112_p4), %s183_s29, 4294966784  ;;  %p5113_p5 = scmp.eq.s32.totalorder %s4456_s16, 0 }
  0x69   : > { %4379 = dma.done.wait (%p5113_p5), [#allocation10], 19136   ;;  %p5114_p8 = pmov %p5113_p5 }
  0x6a   : > { %vm229_vm0 = vcmask 130048   ;;  %vm220_vm1 = vcmask 588800   ;;  %v4409_v0 = vmov 0.0   ;;  %vm223_vm2 = vcmask 582656   ;;  %v268_v1 = vld [vmem:[%s4613_s30 + $0x10] sm:$0xff]  ;;  %v266_v2 = vld [vmem:[%s4613_s30] sm:$0xff] }
  0x6b   : > { %4381 = vsyncadd (%p5114_p8), [#allocation10], 4294948160  ;;  %228 = vst [vmem:[#allocation3] sm:$0xff] %v4409_v0  ;;  %v269_v3 = vld [vmem:[%s4613_s30 + $0x18] sm:$0xff]  ;;  %s4410_s18 = smov 4   ;;  %v267_v4 = vld [vmem:[%s4613_s30 + $0x8] sm:$0xff] }
  0x6c   : > { %230 = vst.msk [vmem:[#allocation3 + $0x8] sm:$0xff] %vm229_vm0, %v4409_v0  ;;  %231 = vst [vmem:[#allocation3 + $0x10] sm:$0xff] %v4409_v0  ;;  %278 = vrot.lane.b32.xlu1 %v268_v1, %s4410_s18  ;;  %274 = vrot.lane.b32.xlu0 %v266_v2, %s4410_s18  ;;  %v4091_v5 = vld [vmem:[#allocation9] sm:$0xff]   ;;  %v4093_v7 = vld [vmem:[#allocation9 + $0x8] sm:$0xff]   ;;  %vm354_vm3 = vcmask 1043456   ;;  %vm286_vm4 = vcmask 556064  }
  0x6d   : > { %232 = vst.msk [vmem:[#allocation3 + $0x18] sm:$0xff] %vm229_vm0, %v4409_v0  ;;  %233 = vst [vmem:[#allocation3 + $0x20] sm:$0x3] %v4409_v0  ;;  %v4092_v6 = vld [vmem:[#allocation9 + $0x24] sm:$0xff]   ;;  %3870 = vmatprep.subr.bf16.mxu0 %v4091_v5  ;;  %v4094_v8 = vld [vmem:[#allocation9 + $0x2c] sm:$0xff]   ;;  %v4411_v47 = vmov 0  }
  0x6e   : > { %236 = vst [vmem:[#allocation3 + $0x30] sm:$0xff] %v4409_v0  ;;  %237 = vst.msk [vmem:[#allocation3 + $0x38] sm:$0xff] %vm229_vm0, %v4409_v0  ;;  %3856 = vmatprep.subr.bf16.mxu1 %v4092_v6  ;;  %3871 = vmatpush3.bf16.msra.mxu0 %v4091_v5  ;;  %v4095_v9 = vld [vmem:[#allocation9 + $0x10] sm:$0xff]   ;;  %v4097_v11 = vld [vmem:[#allocation9 + $0x18] sm:$0xff]   ;;  %vm234_vm5 = vcmask 123904   ;;  %vm613_vm6 = vcmask 1040384  }
  0x6f   : > { %238 = vst [vmem:[#allocation3 + $0x40] sm:$0xff] %v4409_v0  ;;  %239 = vst.msk [vmem:[#allocation3 + $0x48] sm:$0xff] %vm229_vm0, %v4409_v0  ;;  %3857 = vmatpush3.bf16.msra.mxu1 %v4092_v6  ;;  %3872 = vmatprep.subr.bf16.mxu0 %v4093_v7  ;;  %v4096_v10 = vld [vmem:[#allocation9 + $0x34] sm:$0xff]   ;;  %v4098_v12 = vld [vmem:[#allocation9 + $0x3c] sm:$0xff]   ;;  %s4412_s20 = smov 8   ;;  %vm638_vm7 = vcmask 1047617  }
  0x70   : > { %240 = vst [vmem:[#allocation3 + $0x50] sm:$0x3] %v4409_v0  ;;  %242 = vst [vmem:[#allocation4] sm:$0xff] %v4409_v0  ;;  %280 = vrot.lane.b32.xlu1 %v269_v3, %s4410_s18  ;;  %276 = vrot.lane.b32.xlu0 %v267_v4, %s4410_s18  ;;  %v4099_v13 = vld [vmem:[#allocation9 + $0x20] ss:$0 sps:$4 sm:$0xff]   ;;  %v4101_v17 = vld [vmem:[#allocation9 + $0x48] sm:$0xff]  }
  0x71   : > { %243 = vst.msk [vmem:[#allocation4 + $0x8] sm:$0xff] %vm229_vm0, %v4409_v0  ;;  %244 = vst [vmem:[#allocation4 + $0x10] sm:$0xff] %v4409_v0  ;;  %3858 = vmatprep.subr.bf16.mxu1 %v4094_v8  ;;  %v4100_v14 = vld [vmem:[#allocation9 + $0x44] ss:$0 sps:$4 sm:$0xff]   ;;  %v441_v15 = vsel %vm354_vm3, %v4099_v13, 0  ;;  %v4102_v36 = vld [vmem:[#allocation9 + $0x50] sm:$0xff]  }
  0x72   : > { %245 = vst.msk [vmem:[#allocation4 + $0x18] sm:$0xff] %vm229_vm0, %v4409_v0  ;;  %246 = vst [vmem:[#allocation4 + $0x20] sm:$0x3] %v4409_v0  ;;  %3873 = vmatpush3.bf16.msra.mxu0 %v4093_v7  ;;  %v356_v16 = vsel %vm354_vm3, %v4100_v14, 0  ;;  %v4103_v38 = vld [vmem:[#allocation9 + $0x58] sm:$0xff]   ;;  %v4104_v39 = vld [vmem:[#allocation9 + $0x60] sm:$0xff]  }
  0x73   : > { %248 = vst [vmem:[#allocation4 + $0x30] sm:$0xff] %v4409_v0  ;;  %249 = vst.msk [vmem:[#allocation4 + $0x38] sm:$0xff] %vm229_vm0, %v4409_v0  ;;  %3859 = vmatpush3.bf16.msra.mxu1 %v4094_v8  ;;  %3874 = vmatprep.subr.bf16.mxu0 %v4095_v9  ;;  %v4105_v40 = vld [vmem:[#allocation9 + $0x68] ss:$0 sps:$4 sm:$0xff]   ;;  %v4106_v45 = vld [vmem:[#allocation9 + $0xfc] sm:$0xff]   ;;  %vm640_vm8 = vcmask 64513  }
  0x74   : > { %250 = vst [vmem:[#allocation4 + $0x40] sm:$0xff] %v4409_v0  ;;  %251 = vst.msk [vmem:[#allocation4 + $0x48] sm:$0xff] %vm229_vm0, %v4409_v0  ;;  %3860 = vmatprep.subr.bf16.mxu1 %v4096_v10  ;;  %v541_v41 = vsel %vm354_vm3, %v4105_v40, 0  ;;  %v4107_v46 = vld [vmem:[#allocation9 + $0xb4] sm:$0xff]   ;;  %v4108_v48 = vld [vmem:[#allocation9 + $0x104] sm:$0xff]   ;;  %vm642_vm9 = vcmask 1047616  }
  0x75   : > { %252 = vst [vmem:[#allocation4 + $0x50] sm:$0x3] %v4409_v0  ;;  %225 = vst.msk [vmem:[#allocation2 + $0x18] sm:$0xff] %vm220_vm1, %v4409_v0  ;;  %v4109_v49 = vld [vmem:[#allocation9 + $0xbc] sm:$0xff]   ;;  %v4110_v50 = vld [vmem:[#allocation9 + $0x10c] sm:$0xff]   ;;  %vm644_vm10 = vcmask 64512  }
  0x76   : > { %226 = vst.msk [vmem:[#allocation2 + $0x20] sm:$0xff] %vm220_vm1, %v4409_v0  ;;  %221 = vst.msk [vmem:[#allocation2] sm:$0xff] %vm220_vm1, %v4409_v0  ;;  %3875 = vmatpush3.bf16.msra.mxu0 %v4095_v9  ;;  %v4111_v51 = vld [vmem:[#allocation9 + $0xc4] sm:$0xff]   ;;  %v4112_v52 = vld [vmem:[#allocation9 + $0x114] sm:$0xff]   ;;  %vm646_vm11 = vcmask 1040448   ;;  %vm648_vm12 = vcmask 57344  }
  0x77   : > { %222 = vst.msk [vmem:[#allocation2 + $0x8] sm:$0xff] %vm220_vm1, %v4409_v0  ;;  %3861 = vmatpush3.bf16.msra.mxu1 %v4096_v10  ;;  %3876 = vmatprep.subr.bf16.mxu0 %v4097_v11  ;;  %v4113_v53 = vld [vmem:[#allocation9 + $0xcc] sm:$0xff]   ;;  %v4114_v54 = vld [vmem:[#allocation9 + $0x11c] sm:$0xff]   ;;  %v4115_v59 = vld [vmem:[#allocation9 + $0xd4] sm:$0xff]   ;;  %vm1013_vm13 = vcmask 1046528   ;;  %s216_s17 = scalar_lea.vmem [#allocation12], %s3577_s22 }
  0x78   : > { %227 = vst.msk [vmem:[#allocation2 + $0x28] sm:$0x3] %vm223_vm2, %v4409_v0  ;;  %224 = vst.msk [vmem:[#allocation2 + $0x10] sm:$0x3] %vm223_vm2, %v4409_v0  ;;  %3862 = vmatprep.subr.bf16.mxu1 %v4098_v12  ;;  %v4116_v60 = vld [vmem:[#allocation9 + $0x124] sm:$0xff]   ;;  %v4117_v2 = vld [vmem:[#allocation9 + $0xdc] sm:$0xff]  }
  0x79   : > { %v3602_v62 = vld [vmem:[#allocation11] ss:$0 sm:$0xff]  ;;  %235 = vst.msk [vmem:[#allocation3 + $0x28] sm:$0x3] %vm234_vm5, %v4409_v0  ;;  %241 = vst.msk [vmem:[#allocation3 + $0x58] sm:$0x3] %vm234_vm5, %v4409_v0 }
  0x7a   : > { %3877 = vmatpush3.bf16.msra.mxu0 %v4097_v11  ;;  %247 = vst.msk [vmem:[#allocation4 + $0x28] sm:$0x3] %vm234_vm5, %v4409_v0  ;;  %253 = vst.msk [vmem:[#allocation4 + $0x58] sm:$0x3] %vm234_vm5, %v4409_v0  ;;  %v4118_v8 = vld [vmem:[#allocation9 + $0x12c] sm:$0xff]   ;;  %s3475_s24 = sshll.u32 %s216_s17, 4  ;;  %s5048_s24 = int_to_ptr.vmem [resolvable:$true] %s3475_s24 }
  0x7b   : > { %3863 = vmatpush3.bf16.msra.mxu1 %v4098_v12  ;;  %4007 = vmatprep.subr.msk.bf16.mxu0 %vm354_vm3, %v4099_v13  ;;  %v4119_v13 = vld [vmem:[#allocation9 + $0xe4] sm:$0xff]   ;;  %vm702_vm14 = vsmask.f32 7424  ;;  %s3792_s26 = sshll.u32 %s4456_s16, 9  ;;  %s3461_s8 = scalar_lea.sflag [#allocation8], %s4607_s28 }
  0x7c   : > { %4006 = vmatprep.subr.msk.bf16.mxu1 %vm354_vm3, %v4100_v14  ;;  %s5053_s5 = scalar_lea.hbm %s5101_s3, %s3792_s26  ;;  %s4330_s16 = scalar_lea.vmem %s5048_s24, 512 }
  0x7d   : > { %p4331_p11 = scmp.ne.s32.totalorder %s5048_s24, %s4330_s16  ;;  %p5115_p0 = scmp.ne.s32.totalorder %s5110_s6, 0 }
  0x7e   : > { %3879 = vmatpush3.bf16.msra.mxu0 %v441_v15  ;;  %s4413_s9 = smov [#allocation12]  }
  0x7f   : > { %3865 = vmatpush3.bf16.msra.mxu1 %v356_v16  ;;  %3884 = vmatprep.subr.bf16.mxu0 %v4101_v17  ;;  %v4120_v16 = vld [vmem:[#allocation9 + $0x134] sm:$0xff]   ;;  %p4332_p1 = pnand %p4331_p11, %p5115_p0  ;;  %s4334_s25 = sshll.u32 %s4413_s9, 4  ;;  %s4335_s25 = int_to_ptr.vmem [resolvable:$false] %s4334_s25 }
  0x80   : > { %831 = vmatprep.subr.bf16.mxu1 %v4411_v47  ;;  %s4336_s10 = scalar_lea.vmem %s4335_s25, 1024  ;;  %p4337_p7 = scmp.lt.s32.totalorder %s5048_s24, %s4335_s25 }
  0x81   : > { %p4333_p3 = pneg %p4332_p1  ;;  %p4338_p9 = scmp.lt.s32.totalorder %s4336_s10, %s4330_s16 }
  0x83   : > { %p4339_p12 = por %p4338_p9, %p4337_p7 }
  0x85   : > { %p4340_p2 = pnand %p4339_p12, %p4333_p3 }
  0xde   : > { %v279_v18 = vpop.permute.xlu1 %278  ;;  %v275_v19 = vpop.permute.xlu0 %274 }
  0xdf   : > { %289 = vst.msk [vmem:[#allocation2 + $0x19] sm:$0xff] %vm286_vm4, %v279_v18  ;;  %287 = vst.msk [vmem:[#allocation2 + $0x1] sm:$0xff] %vm286_vm4, %v275_v19  ;;  %v4121_v19 = vld [vmem:[#allocation9 + $0xec] sm:$0xff]  }
  0xe2   : > { %v281_v20 = vpop.permute.xlu1 %280  ;;  %v277_v21 = vpop.permute.xlu0 %276 }
  0xe3   : > { %290 = vst.msk [vmem:[#allocation2 + $0x21] sm:$0xff] %vm286_vm4, %v281_v20  ;;  %288 = vst.msk [vmem:[#allocation2 + $0x9] sm:$0xff] %vm286_vm4, %v277_v21 }
  0xe6   : > { %v306_v22 = vld [vmem:[#allocation2 + $0x1] sm:$0xff]  ;;  %v308_v24 = vld [vmem:[#allocation2 + $0x19] sm:$0xff] }
  0xe7   : > { %v291_v23 = vld [vmem:[#allocation2] sm:$0xff]  ;;  %v293_v25 = vld [vmem:[#allocation2 + $0x18] sm:$0xff] }
  0xea   : > { %v307_v26 = vld [vmem:[#allocation2 + $0x9] sm:$0xff]  ;;  %v309_v28 = vld [vmem:[#allocation2 + $0x21] sm:$0xff] }
  0xeb   : > { %v292_v27 = vld [vmem:[#allocation2 + $0x8] sm:$0xff]  ;;  %v4669_v29 = vpack.c.bf16 %v307_v26, %v306_v22  ;;  %v4673_v31 = vpack.c.bf16 %v309_v28, %v308_v24  ;;  %v294_v32 = vld [vmem:[#allocation2 + $0x20] sm:$0xff] }
  0xec   : > { %v4671_v30 = vpack.c.bf16 %v292_v27, %v291_v23  ;;  %v492_v33 = vld [vmem:[#allocation2 + $0x2] sm:$0xff]  ;;  %v493_v34 = vld [vmem:[#allocation2 + $0xa] sm:$0xff]  ;;  %v4675_v35 = vpack.c.bf16 %v294_v32, %v293_v25  ;;  %v494_v42 = vld [vmem:[#allocation2 + $0x1a] sm:$0xff] }
  0xed   : > { %3866 = vmatprep.mubr.msk.bf16.mxu1 %vm220_vm1, %v4669_v29  ;;  %v4681_v37 = vpack.c.bf16 %v493_v34, %v492_v33  ;;  %v495_v43 = vld [vmem:[#allocation2 + $0x22] sm:$0xff]  ;;  %v4122_v22 = vld [vmem:[#allocation9 + $0x13c] sm:$0xff]  }
  0xee   : > { %3880 = vmatprep.mubr.msk.bf16.mxu0 %vm220_vm1, %v4671_v30  ;;  %3867 = vmatmul.mubr.msk.bf16.vlgmr.msra.gmra.mrb[0].mxu1 %vm220_vm1, %v4673_v31  ;;  %v4691_v44 = vpack.c.bf16 %v495_v43, %v494_v42  ;;  %v4123_v25 = vld [vmem:[#allocation9 + $0xf4] sm:$0xff]  }
  0xef   : > { %3881 = vmatmul.mubr.msk.bf16.vlgmr.msra.gmra.mrb[0].mxu0 %vm220_vm1, %v4675_v35  ;;  %832 = vmatpush1.bf16.msra.mxu1 %v4107_v46 }
  0xf0   : > { %3885 = vmatpush3.bf16.msra.mxu0 %v4101_v17  ;;  %3894 = vmatprep.mubr.msk.bf16.mxu0 %vm220_vm1, %v4681_v37 }
  0xf1   : > { %3886 = vmatprep.subr.bf16.mxu0 %v4102_v36  ;;  %833 = vmatprep.subr.bf16.mxu1 %v4411_v47 }
  0xf3   : > { %834 = vmatpush1.bf16.msra.mxu1 %v4109_v49 }
  0xf4   : > { %3887 = vmatpush3.bf16.msra.mxu0 %v4102_v36  ;;  %835 = vmatprep.subr.bf16.mxu1 %v4411_v47 }
  0xf5   : > { %3888 = vmatprep.subr.bf16.mxu0 %v4103_v38 }
  0xf7   : > { %836 = vmatpush1.bf16.msra.mxu1 %v4111_v51 }
  0xf8   : > { %3889 = vmatpush3.bf16.msra.mxu0 %v4103_v38  ;;  %837 = vmatprep.subr.bf16.mxu1 %v4411_v47 }
  0xf9   : > { %3890 = vmatprep.subr.bf16.mxu0 %v4104_v39 }
  0xfb   : > { %838 = vmatpush1.bf16.msra.mxu1 %v4113_v53 }
  0xfc   : > { %3891 = vmatpush3.bf16.msra.mxu0 %v4104_v39  ;;  %839 = vmatprep.subr.bf16.mxu1 %v4411_v47 }
  0xfd   : > { %4008 = vmatprep.subr.msk.bf16.mxu0 %vm354_vm3, %v4105_v40 }
  0xff   : > { %840 = vmatpush1.bf16.msra.mxu1 %v4115_v59 }
 0x100   : > { %3893 = vmatpush3.bf16.msra.mxu0 %v541_v41  ;;  %841 = vmatprep.subr.bf16.mxu1 %v4411_v47 }
 0x101   : > { %1106 = vmatprep.subr.bf16.mxu0 %v4411_v47 }
 0x103   : > { %3895 = vmatmul.mubr.msk.bf16.vlgmr.msra.gmra.mrb[0].mxu0 %vm220_vm1, %v4691_v44  ;;  %842 = vmatpush1.bf16.msra.mxu1 %v4117_v2 }
 0x104   : > { %1107 = vmatpush1.bf16.msra.mxu0 %v4106_v45  ;;  %843 = vmatprep.subr.bf16.mxu1 %v4411_v47 }
 0x105   : > { %1108 = vmatprep.subr.bf16.mxu0 %v4411_v47 }
 0x107   : > { %844 = vmatpush1.bf16.msra.mxu1 %v4119_v13 }
 0x108   : > { %1109 = vmatpush1.bf16.msra.mxu0 %v4108_v48  ;;  %845 = vmatprep.subr.bf16.mxu1 %v4411_v47 }
 0x109   : > { %1110 = vmatprep.subr.bf16.mxu0 %v4411_v47 }
 0x10b   : > { %846 = vmatpush1.bf16.msra.mxu1 %v4121_v19 }
 0x10c   : > { %1111 = vmatpush1.bf16.msra.mxu0 %v4110_v50  ;;  %847 = vmatprep.subr.bf16.mxu1 %v4411_v47 }
 0x10d   : > { %1112 = vmatprep.subr.bf16.mxu0 %v4411_v47 }
 0x10f   : > { %848 = vmatpush1.bf16.msra.mxu1 %v4123_v25 }
 0x110   : > { %1113 = vmatpush1.bf16.msra.mxu0 %v4112_v52  ;;  %940 = vmatprep.subr.bf16.mxu1 %v4411_v47 }
 0x111   : > { %1114 = vmatprep.subr.bf16.mxu0 %v4411_v47 }
 0x114   : > { %1115 = vmatpush1.bf16.msra.mxu0 %v4114_v54 }
 0x115   : > { %1116 = vmatprep.subr.bf16.mxu0 %v4411_v47 }
 0x118   : > { %1117 = vmatpush1.bf16.msra.mxu0 %v4116_v60 }
 0x119   : > { %1118 = vmatprep.subr.bf16.mxu0 %v4411_v47 }
 0x11c   : > { %1119 = vmatpush1.bf16.msra.mxu0 %v4118_v8 }
 0x11d   : > { %1120 = vmatprep.subr.bf16.mxu0 %v4411_v47 }
 0x120   : > { %1121 = vmatpush1.bf16.msra.mxu0 %v4120_v16 }
 0x121   : > { %1122 = vmatprep.subr.bf16.mxu0 %v4411_v47 }
 0x124   : > { %1123 = vmatpush1.bf16.msra.mxu0 %v4122_v22 }
 0x125   : > { %1719 = vmatprep.subr.bf16.mxu0 %v4411_v47 }
 0x1c1   : > { %v3868_v55 = vpop.f32.mrb[0].mxu1 }
 0x1c2   : > { %v392_v56 = vpop.f32.mrb[1].mxu1 }
 0x1c3   : > { %v3869_v57 = vpop.f32.mrb[2].mxu1 }
 0x1c4   : > { %v395_v58 = vpop.f32.mrb[3].mxu1 }
 0x1d6   : > { %v3896_v61 = vpop.f32.mrb[0].mxu0 }
 0x1d7   : > { %v3982_v63 = vadd.f32 %v3896_v61, %v3868_v55  ;;  %v577_v1 = vpop.f32.mrb[1].mxu0 }
 0x1d8   : > { %v3983_v3 = vadd.f32 %v577_v1, %v392_v56  ;;  %v3897_v4 = vpop.f32.mrb[2].mxu0 }
 0x1d9   : > { %v603_v5 = vadd.f32 %v3982_v63, %v3602_v62  ;;  %v3984_v6 = vadd.f32 %v3897_v4, %v3869_v57  ;;  %v580_v7 = vpop.f32.mrb[3].mxu0 }
 0x1da   : > { %v601_v9 = vadd.f32 %v3983_v3, %v3602_v62  ;;  %v3985_v10 = vadd.f32 %v580_v7, %v395_v58 }
 0x1db   : > { %v607_v11 = vmax.f32 %v603_v5, 0.0  ;;  %v604_v12 = vadd.f32 %v3984_v6, %v3602_v62 }
 0x1dc   : > { %v605_v14 = vmax.f32 %v601_v9, 0.0  ;;  %v602_v0 = vadd.f32 %v3985_v10, %v3602_v62 }
 0x1dd   : > { %v608_v15 = vmax.f32 %v604_v12, 0.0  ;;  %v617_v20 = vrot.slane %v607_v11, 7 }
 0x1de   : > { %v614_v17 = vrot.slane %v605_v14, 7  ;;  %v606_v18 = vmax.f32 %v602_v0, 0.0 }
 0x1df   : > { %v618_v21 = vrot.slane %v608_v15, 7 }
 0x1e0   : > { %v615_v23 = vrot.slane %v606_v18, 7  ;;  %620 = vrot.lane.b32.xlu0 %v614_v17, %s4412_s20 }
 0x1e1   : > { %v619_v24 = vsel %vm613_vm6, %v617_v20, %v618_v21 }
 0x1e2   : > { %v616_v26 = vsel %vm613_vm6, %v614_v17, %v615_v23 }
 0x1e3   : > { %622 = vrot.lane.b32.xlu1 %v616_v26, %s4412_s20 }
 0x1e4   : > { %624 = vrot.lane.b32.xlu0 %v615_v23, %s4412_s20 }
 0x1e7   : > { %626 = vrot.lane.b32.xlu1 %v617_v20, %s4412_s20 }
 0x1e8   : > { %628 = vrot.lane.b32.xlu0 %v619_v24, %s4412_s20  ;;  %v4124_v24 = vld [vmem:[#allocation9 + $0x6c] sm:$0xff]  }
 0x1eb   : > { %630 = vrot.lane.b32.xlu1 %v618_v21, %s4412_s20 }
 0x252   : > { %v621_v27 = vpop.permute.xlu0 %620 }
 0x253   : > { %639 = vst.msk [vmem:[#allocation3] sm:$0xfe] %vm638_vm7, %v621_v27 }
 0x254   : > { %641 = vst.msk [vmem:[#allocation3 + $0x8] sm:$0xfe] %vm640_vm8, %v621_v27 }
 0x255   : > { %v623_v28 = vpop.permute.xlu1 %622 }
 0x256   : > { %643 = vst.msk [vmem:[#allocation3 + $0x10] sm:$0xff] %vm642_vm9, %v623_v28  ;;  %v625_v32 = vpop.permute.xlu0 %624 }
 0x257   : > { %645 = vst.msk [vmem:[#allocation3 + $0x18] sm:$0xff] %vm644_vm10, %v623_v28 }
 0x258   : > { %647 = vst.msk [vmem:[#allocation3 + $0x20] sm:$0x1] %vm646_vm11, %v625_v32 }
 0x259   : > { %649 = vst.msk [vmem:[#allocation3 + $0x28] sm:$0x1] %vm648_vm12, %v625_v32  ;;  %v627_v33 = vpop.permute.xlu1 %626 }
 0x25a   : > { %650 = vst.msk [vmem:[#allocation3 + $0x30] sm:$0xfe] %vm638_vm7, %v627_v33  ;;  %v629_v34 = vpop.permute.xlu0 %628  ;;  %v989_v38 = vld [vmem:[#allocation3] sm:$0xfc] }
 0x25b   : > { %651 = vst.msk [vmem:[#allocation3 + $0x38] sm:$0xfe] %vm640_vm8, %v627_v33  ;;  %v990_v36 = vld [vmem:[#allocation3 + $0x8] sm:$0xfc]  ;;  %v686_v43 = vld [vmem:[#allocation3] sm:$0xfe] }
 0x25c   : > { %652 = vst.msk [vmem:[#allocation3 + $0x40] sm:$0xff] %vm642_vm9, %v629_v34  ;;  %v687_v39 = vld [vmem:[#allocation3 + $0x8] sm:$0xfe] }
 0x25d   : > { %653 = vst.msk [vmem:[#allocation3 + $0x48] sm:$0xff] %vm644_vm10, %v629_v34  ;;  %v631_v40 = vpop.permute.xlu1 %630  ;;  %v4739_v42 = vld [vmem:[#allocation3 + $0x10] sm:$0xff] }
 0x25e   : > { %v4737_v41 = vld [vmem:[#allocation3 + $0x18] sm:$0xff]  ;;  %654 = vst.msk [vmem:[#allocation3 + $0x50] sm:$0x1] %vm646_vm11, %v631_v40  ;;  %v997_v49 = vpack.c.bf16 %v4739_v42, %v989_v38  ;;  %v694_v52 = vpack.c.bf16 %v4739_v42, %v686_v43 }
 0x25f   : > { %655 = vst.msk [vmem:[#allocation3 + $0x58] sm:$0x1] %vm648_vm12, %v631_v40  ;;  %v998_v46 = vpack.c.bf16 %v4737_v41, %v990_v36  ;;  %v991_v48 = vld [vmem:[#allocation3 + $0x20] sm:$0x3]  ;;  %v695_v51 = vpack.c.bf16 %v4737_v41, %v687_v39 }
 0x260   : > { %v992_v45 = vld [vmem:[#allocation3 + $0x28] sm:$0x3]  ;;  %v999_v54 = vpack.c.bf16 %v991_v48, %v991_v48  ;;  %v688_v56 = vld [vmem:[#allocation3 + $0x20] sm:$0x1]  ;;  %v1014_v58 = vrot.slane %v997_v49, 1  ;;  %v704_v4 = vshrl.u32 %v694_v52, 16 }
 0x261   : > { %v689_v50 = vld [vmem:[#allocation3 + $0x28] sm:$0x1]  ;;  %v1000_v53 = vpack.c.bf16 %v992_v45, %v992_v45  ;;  %v1017_v57 = vrot.slane %v998_v46, 1  ;;  %v716_v59 = vshrl.u32 %v695_v51, 16  ;;  %v718_v60 = vshll.u32 %v695_v51, 16 }
 0x262   : > { %v697_v55 = vpack.c.bf16 %v689_v50, %v689_v50  ;;  %v1015_v62 = vrot.slane %v999_v54, 1  ;;  %v696_v1 = vpack.c.bf16 %v688_v56, %v688_v56  ;;  %v994_v2 = vld [vmem:[#allocation3 + $0x38] sm:$0xfc]  ;;  %v706_v5 = vshll.u32 %v694_v52, 16  ;;  %v993_v13 = vld [vmem:[#allocation3 + $0x30] sm:$0xfc] }
 0x263   : > { %v1018_v61 = vrot.slane %v1000_v53, 1  ;;  %v720_v3 = vrot.slane %v718_v60, 1  ;;  %v691_v7 = vld [vmem:[#allocation3 + $0x38] sm:$0xfe]  ;;  %v4751_v12 = vld [vmem:[#allocation3 + $0x40] sm:$0xff] }
 0x264   : > { %v723_v63 = vshll.u32 %v697_v55, 16  ;;  %v4747_v6 = vld [vmem:[#allocation3 + $0x48] sm:$0xff]  ;;  %v1016_v9 = vsel %vm1013_vm13, %v1014_v58, %v1015_v62  ;;  %v711_v11 = vshll.u32 %v696_v1, 16  ;;  %v708_v0 = vrot.slane %v706_v5, 1  ;;  %v690_v17 = vld [vmem:[#allocation3 + $0x30] sm:$0xfe] }
 0x265   : > { %v1019_v8 = vsel %vm1013_vm13, %v1017_v57, %v1018_v61  ;;  %v721_v14 = vor.u32 %v720_v3, %v716_v59  ;;  %v1002_v15 = vpack.c.bf16 %v4747_v6, %v994_v2  ;;  %v699_v16 = vpack.c.bf16 %v4747_v6, %v691_v7  ;;  %v995_v26 = vld [vmem:[#allocation3 + $0x50] sm:$0x3]  ;;  %v4125_v50 = vld [vmem:[#allocation9 + $0x74] sm:$0xff]   ;;  %v4126_v62 = vld [vmem:[#allocation9 + $0x7c] sm:$0xff]  }
 0x266   : > { %v725_v10 = vrot.slane %v723_v63, 1  ;;  %3634 = vmatprep.mubr.msk.bf16.mxu0 %vm229_vm0, %v1019_v8  ;;  %v713_v18 = vrot.slane %v711_v11, 1  ;;  %v996_v19 = vld [vmem:[#allocation3 + $0x58] sm:$0x3]  ;;  %v1001_v21 = vpack.c.bf16 %v4751_v12, %v993_v13  ;;  %v709_v23 = vor.u32 %v708_v0, %v704_v4  ;;  %v692_v27 = vld [vmem:[#allocation3 + $0x50] sm:$0x1] }
 0x267   : > { %1139 = vmatmul.mubr.bf16.vlgmr.msra.gmra.mrb[4].mxu0 %v1016_v9  ;;  %v693_v20 = vld [vmem:[#allocation3 + $0x58] sm:$0x1]  ;;  %v1004_v25 = vpack.c.bf16 %v996_v19, %v996_v19  ;;  %v698_v28 = vpack.c.bf16 %v4751_v12, %v690_v17  ;;  %v742_v33 = vshll.u32 %v699_v16, 16  ;;  %v1003_v34 = vpack.c.bf16 %v995_v26, %v995_v26  ;;  %v657_v63 = vld [vmem:[#allocation3 + $0x8] sm:$0xff]  ;;  %v4130_v7 = vld [vmem:[#allocation9 + $0x9c] sm:$0xff]  }
 0x268   : > { %v726_v22 = vsel %vm702_vm14, %v721_v14, %v725_v10  ;;  %v701_v32 = vpack.c.bf16 %v693_v20, %v693_v20  ;;  %v714_v36 = vsel %vm702_vm14, %v709_v23, %v713_v18  ;;  %v1023_v38 = vrot.slane %v1002_v15, 1  ;;  %v4127_v3 = vld [vmem:[#allocation9 + $0x84] sm:$0xff]   ;;  %v4128_v4 = vld [vmem:[#allocation9 + $0x8c] sm:$0xff]   ;;  %v4129_v5 = vld [vmem:[#allocation9 + $0x94] sm:$0xff]  }
 0x269   : > { %3612 = vmatprep.mubr.msk.bf16.mxu1 %vm229_vm0, %v726_v22  ;;  %v1024_v39 = vrot.slane %v1004_v25, 1  ;;  %v700_v40 = vpack.c.bf16 %v692_v27, %v692_v27  ;;  %v740_v43 = vshrl.u32 %v699_v16, 16  ;;  %v744_v45 = vrot.slane %v742_v33, 1  ;;  %v4132_v8 = vld [vmem:[#allocation9 + $0xac] sm:$0xff]   ;;  %v661_v10 = vld [vmem:[#allocation3 + $0x38] sm:$0xff]  ;;  %v656_v11 = vld [vmem:[#allocation3] sm:$0xff] }
 0x26a   : > { %864 = vmatmul.mubr.bf16.vlgmr.msra.gmra.mrb[4].mxu1 %v714_v36  ;;  %v747_v46 = vshll.u32 %v701_v32, 16  ;;  %v1021_v48 = vrot.slane %v1003_v34, 1  ;;  %v1020_v51 = vrot.slane %v1001_v21, 1  ;;  %v730_v52 = vshll.u32 %v698_v28, 16  ;;  %v4133_v9 = vld [vmem:[#allocation9 + $0x168] sm:$0xff]   ;;  %v4134_v14 = vld [vmem:[#allocation9 + $0x170] sm:$0xff]  }
 0x26b   : > { %941 = vmatpush1.bf16.msra.mxu1 %v4124_v24  ;;  %v1025_v49 = vsel %vm1013_vm13, %v1023_v38, %v1024_v39  ;;  %v735_v53 = vshll.u32 %v700_v40, 16  ;;  %v745_v54 = vor.u32 %v744_v45, %v740_v43  ;;  %v728_v57 = vshrl.u32 %v698_v28, 16  ;;  %v4135_v15 = vld [vmem:[#allocation9 + $0x178] sm:$0xff]   ;;  %v660_v16 = vld [vmem:[#allocation3 + $0x30] sm:$0xff]  ;;  %v4136_v18 = vld [vmem:[#allocation9 + $0x180] sm:$0xff]  }
 0x26c   : > { %942 = vmatprep.subr.bf16.mxu1 %v4411_v47  ;;  %3635 = vmatprep.mubr.msk.bf16.mxu0 %vm229_vm0, %v1025_v49  ;;  %v749_v55 = vrot.slane %v747_v46, 1  ;;  %v1022_v56 = vsel %vm1013_vm13, %v1020_v51, %v1021_v48  ;;  %v732_v58 = vrot.slane %v730_v52, 1  ;;  %v665_v2 = vpack.c.bf16 %v4737_v41, %v657_v63  ;;  %v4131_v41 = vld [vmem:[#allocation9 + $0xa4] sm:$0xff]   ;;  %v4139_v20 = vld [vmem:[#allocation9 + $0x14c] sm:$0xff]   ;;  %v4154_v39 = vld [vmem:[#allocation9 + $0x258] sm:$0xff]  }
 0x26d   : > { %v737_v59 = vrot.slane %v735_v53, 1  ;;  %v664_v13 = vpack.c.bf16 %v4739_v42, %v656_v11  ;;  %v667_v0 = vpack.c.bf16 %v4747_v6, %v661_v10  ;;  %v666_v17 = vpack.c.bf16 %v4751_v12, %v660_v16  ;;  %v4137_v42 = vld [vmem:[#allocation9 + $0x188] ss:$0 sps:$4 sm:$0xff]   ;;  %v4141_v12 = vld [vmem:[#allocation9 + $0x15c] sm:$0xff]   ;;  %v4142_v21 = vld [vmem:[#allocation9 + $0x164] ss:$0 sps:$4 sm:$0xff]  }
 0x26e   : > { %v750_v60 = vsel %vm702_vm14, %v745_v54, %v749_v55  ;;  %v733_v61 = vor.u32 %v732_v58, %v728_v57  ;;  %v1236_v6 = vsel %vm354_vm3, %v4137_v42, 0  ;;  %v4138_v19 = vld [vmem:[#allocation9 + $0x144] sm:$0xff]   ;;  %v1321_v22 = vsel %vm354_vm3, %v4142_v21, 0  ;;  %v4143_v23 = vld [vmem:[#allocation9 + $0x18c] sm:$0xff]  }
 0x26f   : > { %1147 = vmatmul.mubr.bf16.gmra.mrb[8].mxu0 %v1022_v56  ;;  %943 = vmatpush1.bf16.msra.mxu1 %v4125_v50  ;;  %v4146_v24 = vld [vmem:[#allocation9 + $0x1a4] sm:$0xff]   ;;  %v4147_v25 = vld [vmem:[#allocation9 + $0x1ac] ss:$0 sps:$4 sm:$0xff]   ;;  %v4152_v32 = vld [vmem:[#allocation9 + $0x250] sm:$0xff]  }
 0x270   : > { %3613 = vmatprep.mubr.msk.bf16.mxu1 %vm229_vm0, %v750_v60  ;;  %944 = vmatprep.subr.bf16.mxu1 %v4411_v47  ;;  %v738_v1 = vsel %vm702_vm14, %v733_v61, %v737_v59  ;;  %v1421_v26 = vsel %vm354_vm3, %v4147_v25, 0  ;;  %v4150_v27 = vld [vmem:[#allocation9 + $0x248] sm:$0xff]   ;;  %v4151_v28 = vld [vmem:[#allocation9 + $0x200] sm:$0xff]   ;;  %v4155_v40 = vld [vmem:[#allocation9 + $0x210] sm:$0xff]  }
 0x271   : > { %v4153_v33 = vld [vmem:[#allocation9 + $0x208] sm:$0xff]   ;;  %v4156_v49 = vld [vmem:[#allocation9 + $0x260] sm:$0xff]  }
 0x272   : > { %872 = vmatmul.mubr.bf16.gmra.mrb[8].mxu1 %v738_v1  ;;  %v3636_v11 = vld [vmem:[#allocation11 + $0x1] ss:$0 sm:$0xff] }
 0x273   : > { %945 = vmatpush1.bf16.msra.mxu1 %v4126_v62  ;;  %3623 = vmatprep.mubr.msk.bf16.mxu1 %vm229_vm0, %v665_v2 }
 0x274   : > { %946 = vmatprep.subr.bf16.mxu1 %v4411_v47 }
 0x277   : > { %947 = vmatpush1.bf16.msra.mxu1 %v4127_v3 }
 0x278   : > { %948 = vmatprep.subr.bf16.mxu1 %v4411_v47 }
 0x27b   : > { %949 = vmatpush1.bf16.msra.mxu1 %v4128_v4 }
 0x27c   : > { %950 = vmatprep.subr.bf16.mxu1 %v4411_v47 }
 0x27f   : > { %951 = vmatpush1.bf16.msra.mxu1 %v4129_v5 }
 0x280   : > { %952 = vmatprep.subr.bf16.mxu1 %v4411_v47 }
 0x283   : > { %953 = vmatpush1.bf16.msra.mxu1 %v4130_v7 }
 0x284   : > { %954 = vmatprep.subr.bf16.mxu1 %v4411_v47 }
 0x287   : > { %955 = vmatpush1.bf16.msra.mxu1 %v4131_v41 }
 0x288   : > { %956 = vmatprep.subr.bf16.mxu1 %v4411_v47 }
 0x28b   : > { %957 = vmatpush1.bf16.msra.mxu1 %v4132_v8 }
 0x28c   : > { %3898 = vmatprep.subr.bf16.mxu1 %v4133_v9 }
 0x28e   : > { %973 = vmatmul.mubr.bf16.vlgmr.msra.gmra.mrb[12].mxu1 %v664_v13  ;;  %v4157_v13 = vld [vmem:[#allocation9 + $0x218] sm:$0xff]  }
 0x28f   : > { %3624 = vmatprep.mubr.msk.bf16.mxu1 %vm229_vm0, %v667_v0  ;;  %3899 = vmatpush3.bf16.msra.mxu1 %v4133_v9 }
 0x290   : > { %3900 = vmatprep.subr.bf16.mxu1 %v4134_v14 }
 0x293   : > { %3901 = vmatpush3.bf16.msra.mxu1 %v4134_v14  ;;  %v3658_v14 = vld [vmem:[#allocation11 + $0x2] ss:$0 sm:$0xff] }
 0x294   : > { %3902 = vmatprep.subr.bf16.mxu1 %v4135_v15 }
 0x296   : > { %981 = vmatmul.mubr.bf16.gmra.mrb[16].mxu1 %v666_v17  ;;  %v4158_v17 = vld [vmem:[#allocation9 + $0x268] sm:$0xff]  }
 0x297   : > { %3903 = vmatpush3.bf16.msra.mxu1 %v4135_v15  ;;  %3908 = vmatprep.mubr.msk.bf16.mxu1 %vm220_vm1, %v4669_v29  ;;  %v4140_v29 = vld [vmem:[#allocation9 + $0x154] sm:$0xff]  }
 0x298   : > { %3904 = vmatprep.subr.bf16.mxu1 %v4136_v18 }
 0x29b   : > { %3905 = vmatpush3.bf16.msra.mxu1 %v4136_v18 }
 0x29c   : > { %4009 = vmatprep.subr.msk.bf16.mxu1 %vm354_vm3, %v4137_v42 }
 0x29f   : > { %3907 = vmatpush3.bf16.msra.mxu1 %v1236_v6 }
 0x2a0   : > { %3912 = vmatprep.subr.bf16.mxu1 %v4138_v19 }
 0x2a2   : > { %3909 = vmatmul.mubr.msk.bf16.vlgmr.msra.gmra.mrb[20].mxu1 %vm220_vm1, %v4673_v31  ;;  %v4144_v31 = vld [vmem:[#allocation9 + $0x194] sm:$0xff]  }
 0x2a3   : > { %3913 = vmatpush3.bf16.msra.mxu1 %v4138_v19  ;;  %3922 = vmatprep.mubr.msk.bf16.mxu1 %vm220_vm1, %v4671_v30  ;;  %v4145_v30 = vld [vmem:[#allocation9 + $0x19c] sm:$0xff]  }
 0x2a4   : > { %3914 = vmatprep.subr.bf16.mxu1 %v4139_v20  ;;  %v4159_v19 = vld [vmem:[#allocation9 + $0x220] sm:$0xff]  }
 0x2a7   : > { %3915 = vmatpush3.bf16.msra.mxu1 %v4139_v20 }
 0x2a8   : > { %3916 = vmatprep.subr.bf16.mxu1 %v4140_v29 }
 0x2ab   : > { %3917 = vmatpush3.bf16.msra.mxu1 %v4140_v29 }
 0x2ac   : > { %3918 = vmatprep.subr.bf16.mxu1 %v4141_v12 }
 0x2af   : > { %3919 = vmatpush3.bf16.msra.mxu1 %v4141_v12 }
 0x2b0   : > { %4010 = vmatprep.subr.msk.bf16.mxu1 %vm354_vm3, %v4142_v21 }
 0x2b3   : > { %3921 = vmatpush3.bf16.msra.mxu1 %v1321_v22 }
 0x2b4   : > { %3926 = vmatprep.subr.bf16.mxu1 %v4143_v23 }
 0x2b6   : > { %3923 = vmatmul.mubr.msk.bf16.vlgmr.msra.gmra.mrb[20].mxu1 %vm220_vm1, %v4675_v35  ;;  %v4148_v35 = vld [vmem:[#allocation9 + $0x240] sm:$0xff]  }
 0x2b7   : > { %3927 = vmatpush3.bf16.msra.mxu1 %v4143_v23  ;;  %3936 = vmatprep.mubr.msk.bf16.mxu1 %vm220_vm1, %v4681_v37  ;;  %v4149_v37 = vld [vmem:[#allocation9 + $0x1f8] sm:$0xff]  }
 0x2b8   : > { %3928 = vmatprep.subr.bf16.mxu1 %v4144_v31  ;;  %1720 = vmatpush1.bf16.msra.mxu0 %v4149_v37 }
 0x2b9   : > { %1721 = vmatprep.subr.bf16.mxu0 %v4411_v47 }
 0x2bb   : > { %3929 = vmatpush3.bf16.msra.mxu1 %v4144_v31 }
 0x2bc   : > { %3930 = vmatprep.subr.bf16.mxu1 %v4145_v30  ;;  %1722 = vmatpush1.bf16.msra.mxu0 %v4151_v28  ;;  %v4161_v28 = vld [vmem:[#allocation9 + $0x228] sm:$0xff]  }
 0x2bd   : > { %1723 = vmatprep.subr.bf16.mxu0 %v4411_v47 }
 0x2bf   : > { %3931 = vmatpush3.bf16.msra.mxu1 %v4145_v30 }
 0x2c0   : > { %3932 = vmatprep.subr.bf16.mxu1 %v4146_v24  ;;  %1724 = vmatpush1.bf16.msra.mxu0 %v4153_v33 }
 0x2c1   : > { %1725 = vmatprep.subr.bf16.mxu0 %v4411_v47 }
 0x2c3   : > { %3933 = vmatpush3.bf16.msra.mxu1 %v4146_v24 }
 0x2c4   : > { %4011 = vmatprep.subr.msk.bf16.mxu1 %vm354_vm3, %v4147_v25  ;;  %1726 = vmatpush1.bf16.msra.mxu0 %v4155_v40  ;;  %v4163_v40 = vld [vmem:[#allocation9 + $0x230] sm:$0xff]  }
 0x2c5   : > { %1727 = vmatprep.subr.bf16.mxu0 %v4411_v47 }
 0x2c7   : > { %3935 = vmatpush3.bf16.msra.mxu1 %v1421_v26  ;;  %v4160_v26 = vld [vmem:[#allocation9 + $0x270] sm:$0xff]  }
 0x2c8   : > { %1993 = vmatprep.subr.bf16.mxu1 %v4411_v47  ;;  %1728 = vmatpush1.bf16.msra.mxu0 %v4157_v13 }
 0x2c9   : > { %1729 = vmatprep.subr.bf16.mxu0 %v4411_v47 }
 0x2ca   : > { %3937 = vmatmul.mubr.msk.bf16.vlgmr.msra.gmra.mrb[20].mxu1 %vm220_vm1, %v4691_v44 }
 0x2cb   : > { %1994 = vmatpush1.bf16.msra.mxu1 %v4148_v35 }
 0x2cc   : > { %1995 = vmatprep.subr.bf16.mxu1 %v4411_v47  ;;  %1730 = vmatpush1.bf16.msra.mxu0 %v4159_v19 }
 0x2cd   : > { %1731 = vmatprep.subr.bf16.mxu0 %v4411_v47 }
 0x2cf   : > { %1996 = vmatpush1.bf16.msra.mxu1 %v4150_v27 }
 0x2d0   : > { %1997 = vmatprep.subr.bf16.mxu1 %v4411_v47  ;;  %1732 = vmatpush1.bf16.msra.mxu0 %v4161_v28 }
 0x2d1   : > { %1733 = vmatprep.subr.bf16.mxu0 %v4411_v47 }
 0x2d3   : > { %1998 = vmatpush1.bf16.msra.mxu1 %v4152_v32 }
 0x2d4   : > { %1999 = vmatprep.subr.bf16.mxu1 %v4411_v47  ;;  %1734 = vmatpush1.bf16.msra.mxu0 %v4163_v40 }
 0x2d5   : > { %1735 = vmatprep.subr.bf16.mxu0 %v4411_v47 }
 0x2d7   : > { %2000 = vmatpush1.bf16.msra.mxu1 %v4154_v39  ;;  %v4162_v39 = vld [vmem:[#allocation9 + $0x278] sm:$0xff]  }
 0x2d8   : > { %2001 = vmatprep.subr.bf16.mxu1 %v4411_v47 }
 0x2db   : > { %2002 = vmatpush1.bf16.msra.mxu1 %v4156_v49 }
 0x2dc   : > { %2003 = vmatprep.subr.bf16.mxu1 %v4411_v47 }
 0x2df   : > { %2004 = vmatpush1.bf16.msra.mxu1 %v4158_v17 }
 0x2e0   : > { %2005 = vmatprep.subr.bf16.mxu1 %v4411_v47 }
 0x2e3   : > { %2006 = vmatpush1.bf16.msra.mxu1 %v4160_v26 }
 0x2e4   : > { %2007 = vmatprep.subr.bf16.mxu1 %v4411_v47 }
 0x2e7   : > { %2008 = vmatpush1.bf16.msra.mxu1 %v4162_v39  ;;  %v4166_v39 = vld [vmem:[#allocation9 + $0x1b0] sm:$0xff]  }
 0x2e8   : > { %2009 = vmatprep.subr.bf16.mxu1 %v4411_v47 }
 0x33a   : > { %v1140_v34 = vpop.f32.mrb[4].mxu0 }
 0x33b   : > { %v1142_v44 = vpop.f32.mrb[5].mxu0 }
 0x33c   : > { %v1143_v36 = vpop.f32.mrb[6].mxu0 }
 0x33d   : > { %v1145_v38 = vpop.f32.mrb[7].mxu0  ;;  %v865_v43 = vpop.f32.mrb[4].mxu1 }
 0x33e   : > { %v867_v45 = vpop.f32.mrb[5].mxu1 }
 0x33f   : > { %v868_v46 = vpop.f32.mrb[6].mxu1 }
 0x340   : > { %v870_v48 = vpop.f32.mrb[7].mxu1 }
 0x341   : > { %v4164_v48 = vld [vmem:[#allocation9 + $0x280] sm:$0xff]  }
 0x342   : > { %v1148_v50 = vpop.f32.mrb[8].mxu0  ;;  %2010 = vmatpush1.bf16.msra.mxu1 %v4164_v48 }
 0x343   : > { %v1150_v51 = vpop.f32.mrb[9].mxu0  ;;  %2382 = vmatprep.subr.bf16.mxu1 %v4411_v47 }
 0x344   : > { %v1151_v52 = vpop.f32.mrb[10].mxu0 }
 0x345   : > { %v1153_v53 = vpop.f32.mrb[11].mxu0  ;;  %v873_v54 = vpop.f32.mrb[8].mxu1 }
 0x346   : > { %v875_v55 = vpop.f32.mrb[9].mxu1 }
 0x347   : > { %v876_v56 = vpop.f32.mrb[10].mxu1 }
 0x348   : > { %v878_v57 = vpop.f32.mrb[11].mxu1 }
 0x361   : > { %v974_v58 = vpop.f32.mrb[12].mxu1 }
 0x362   : > { %v975_v59 = vadd.f32 %v974_v58, %v865_v43  ;;  %v976_v60 = vpop.f32.mrb[13].mxu1 }
 0x363   : > { %v977_v61 = vpop.f32.mrb[14].mxu1 }
 0x364   : > { %v1155_v62 = vadd.f32 %v1140_v34, %v975_v59  ;;  %v978_v63 = vadd.f32 %v977_v61, %v868_v46  ;;  %v979_v1 = vpop.f32.mrb[15].mxu1 }
 0x366   : > { %v1156_v2 = vadd.f32 %v1143_v36, %v978_v63  ;;  %v1164_v15 = vadd.f32 %v3636_v11, %v1155_v62 }
 0x368   : > { %v1165_v20 = vadd.f32 %v3636_v11, %v1156_v2  ;;  %v1168_v30 = vmax.f32 %v1164_v15, 0.0 }
 0x369   : > { %v982_v3 = vpop.f32.mrb[16].mxu1 }
 0x36a   : > { %v983_v4 = vadd.f32 %v982_v3, %v873_v54  ;;  %v984_v5 = vpop.f32.mrb[17].mxu1  ;;  %v1169_v33 = vmax.f32 %v1165_v20, 0.0 }
 0x36b   : > { %v985_v7 = vpop.f32.mrb[18].mxu1 }
 0x36c   : > { %v1157_v41 = vadd.f32 %v1148_v50, %v983_v4  ;;  %v986_v8 = vadd.f32 %v985_v7, %v876_v56  ;;  %v987_v9 = vpop.f32.mrb[19].mxu1  ;;  %v4165_v50 = vld [vmem:[#allocation9 + $0x238] sm:$0xff]  }
 0x36d   : > { %1736 = vmatpush1.bf16.msra.mxu0 %v4165_v50 }
 0x36e   : > { %v1158_v10 = vadd.f32 %v1151_v52, %v986_v8  ;;  %v1166_v0 = vadd.f32 %v3636_v11, %v1157_v41  ;;  %1828 = vmatprep.subr.bf16.mxu0 %v4411_v47 }
 0x370   : > { %v1167_v18 = vadd.f32 %v3636_v11, %v1158_v10  ;;  %v1170_v21 = vmax.f32 %v1166_v0, 0.0 }
 0x372   : > { %v1171_v37 = vmax.f32 %v1167_v18, 0.0 }
 0x39d   : > { %v3938_v16 = vpop.f32.mrb[20].mxu1 }
 0x39e   : > { %v1483_v42 = vadd.f32 %v3938_v16, %v3658_v14  ;;  %v1457_v6 = vpop.f32.mrb[21].mxu1 }
 0x39f   : > { %v1481_v29 = vadd.f32 %v3658_v14, %v1457_v6  ;;  %v3939_v12 = vpop.f32.mrb[22].mxu1 }
 0x3a0   : > { %v1487_v22 = vmax.f32 %v1483_v42, 0.0  ;;  %v1484_v23 = vadd.f32 %v3939_v12, %v3658_v14  ;;  %v1460_v31 = vpop.f32.mrb[23].mxu1 }
 0x3a1   : > { %v1485_v24 = vmax.f32 %v1481_v29, 0.0  ;;  %v1482_v25 = vadd.f32 %v3658_v14, %v1460_v31 }
 0x3a2   : > { %v1491_v35 = vadd.f32 %v1487_v22, %v1170_v21  ;;  %v1488_v27 = vmax.f32 %v1484_v23, 0.0 }
 0x3a3   : > { %v1489_v32 = vadd.f32 %v1485_v24, %v1168_v30  ;;  %v1486_v34 = vmax.f32 %v1482_v25, 0.0 }
 0x3a4   : > { %v1492_v44 = vadd.f32 %v1488_v27, %v1171_v37  ;;  %v1500_v43 = vrot.slane %v1491_v35, 7 }
 0x3a5   : > { %v1497_v36 = vrot.slane %v1489_v32, 7  ;;  %v1490_v38 = vadd.f32 %v1486_v34, %v1169_v33 }
 0x3a6   : > { %v1501_v45 = vrot.slane %v1492_v44, 7 }
 0x3a7   : > { %v1498_v46 = vrot.slane %v1490_v38, 7  ;;  %1503 = vrot.lane.b32.xlu0 %v1497_v36, %s4412_s20 }
 0x3a8   : > { %v1502_v49 = vsel %vm613_vm6, %v1500_v43, %v1501_v45 }
 0x3a9   : > { %v1499_v51 = vsel %vm613_vm6, %v1497_v36, %v1498_v46 }
 0x3aa   : > { %1505 = vrot.lane.b32.xlu1 %v1499_v51, %s4412_s20 }
 0x3ab   : > { %1507 = vrot.lane.b32.xlu0 %v1498_v46, %s4412_s20 }
 0x3ae   : > { %1509 = vrot.lane.b32.xlu1 %v1500_v43, %s4412_s20 }
 0x3af   : > { %1511 = vrot.lane.b32.xlu0 %v1502_v49, %s4412_s20 }
 0x3b2   : > { %1513 = vrot.lane.b32.xlu1 %v1501_v45, %s4412_s20 }
 0x419   : > { %v1504_v52 = vpop.permute.xlu0 %1503 }
 0x41a   : > { %1521 = vst.msk [vmem:[#allocation3] sm:$0xfe] %vm638_vm7, %v1504_v52  ;;  %1533 = vst.msk [vmem:[#allocation4] sm:$0xfe] %vm638_vm7, %v1504_v52 }
 0x41b   : > { %1522 = vst.msk [vmem:[#allocation3 + $0x8] sm:$0xfe] %vm640_vm8, %v1504_v52  ;;  %1534 = vst.msk [vmem:[#allocation4 + $0x8] sm:$0xfe] %vm640_vm8, %v1504_v52 }
 0x41c   : > { %v1506_v53 = vpop.permute.xlu1 %1505 }
 0x41d   : > { %1523 = vst.msk [vmem:[#allocation3 + $0x10] sm:$0xff] %vm642_vm9, %v1506_v53  ;;  %1535 = vst.msk [vmem:[#allocation4 + $0x10] sm:$0xff] %vm642_vm9, %v1506_v53  ;;  %v1508_v54 = vpop.permute.xlu0 %1507 }
 0x41e   : > { %1524 = vst.msk [vmem:[#allocation3 + $0x18] sm:$0xff] %vm644_vm10, %v1506_v53  ;;  %1536 = vst.msk [vmem:[#allocation4 + $0x18] sm:$0xff] %vm644_vm10, %v1506_v53 }
 0x41f   : > { %1525 = vst.msk [vmem:[#allocation3 + $0x20] sm:$0x1] %vm646_vm11, %v1508_v54  ;;  %1537 = vst.msk [vmem:[#allocation4 + $0x20] sm:$0x1] %vm646_vm11, %v1508_v54 }
 0x420   : > { %1526 = vst.msk [vmem:[#allocation3 + $0x28] sm:$0x1] %vm648_vm12, %v1508_v54  ;;  %1538 = vst.msk [vmem:[#allocation4 + $0x28] sm:$0x1] %vm648_vm12, %v1508_v54  ;;  %v1510_v55 = vpop.permute.xlu1 %1509 }
 0x421   : > { %1527 = vst.msk [vmem:[#allocation3 + $0x30] sm:$0xfe] %vm638_vm7, %v1510_v55  ;;  %1539 = vst.msk [vmem:[#allocation4 + $0x30] sm:$0xfe] %vm638_vm7, %v1510_v55  ;;  %v1512_v56 = vpop.permute.xlu0 %1511  ;;  %v1877_v58 = vld [vmem:[#allocation3] sm:$0xfc] }
 0x422   : > { %1528 = vst.msk [vmem:[#allocation3 + $0x38] sm:$0xfe] %vm640_vm8, %v1510_v55  ;;  %1540 = vst.msk [vmem:[#allocation4 + $0x38] sm:$0xfe] %vm640_vm8, %v1510_v55  ;;  %v1878_v57 = vld [vmem:[#allocation3 + $0x8] sm:$0xfc] }
 0x423   : > { %1529 = vst.msk [vmem:[#allocation3 + $0x40] sm:$0xff] %vm642_vm9, %v1512_v56  ;;  %1541 = vst.msk [vmem:[#allocation4 + $0x40] sm:$0xff] %vm642_vm9, %v1512_v56  ;;  %v1576_v59 = vld [vmem:[#allocation3 + $0x8] sm:$0xfe]  ;;  %v1575_v63 = vld [vmem:[#allocation3] sm:$0xfe] }
 0x424   : > { %1530 = vst.msk [vmem:[#allocation3 + $0x48] sm:$0xff] %vm644_vm10, %v1512_v56  ;;  %1542 = vst.msk [vmem:[#allocation4 + $0x48] sm:$0xff] %vm644_vm10, %v1512_v56  ;;  %v1514_v60 = vpop.permute.xlu1 %1513  ;;  %v4848_v62 = vld [vmem:[#allocation3 + $0x10] sm:$0xff] }
 0x425   : > { %v4846_v61 = vld [vmem:[#allocation3 + $0x18] sm:$0xff]  ;;  %1531 = vst.msk [vmem:[#allocation3 + $0x50] sm:$0x1] %vm646_vm11, %v1514_v60  ;;  %1543 = vst.msk [vmem:[#allocation4 + $0x50] sm:$0x1] %vm646_vm11, %v1514_v60  ;;  %v1885_v4 = vpack.c.bf16 %v4848_v62, %v1877_v58  ;;  %v1583_v41 = vpack.c.bf16 %v4848_v62, %v1575_v63 }
 0x426   : > { %1532 = vst.msk [vmem:[#allocation3 + $0x58] sm:$0x1] %vm648_vm12, %v1514_v60  ;;  %1544 = vst.msk [vmem:[#allocation4 + $0x58] sm:$0x1] %vm648_vm12, %v1514_v60  ;;  %v1886_v2 = vpack.c.bf16 %v4846_v61, %v1878_v57  ;;  %v1879_v3 = vld [vmem:[#allocation3 + $0x20] sm:$0x3]  ;;  %v1584_v7 = vpack.c.bf16 %v4846_v61, %v1576_v59 }
 0x427   : > { %v1880_v1 = vld [vmem:[#allocation3 + $0x28] sm:$0x3]  ;;  %v1887_v9 = vpack.c.bf16 %v1879_v3, %v1879_v3  ;;  %v1577_v11 = vld [vmem:[#allocation3 + $0x20] sm:$0x1]  ;;  %v1901_v14 = vrot.slane %v1885_v4, 1  ;;  %v1592_v20 = vshrl.u32 %v1583_v41, 16 }
 0x428   : > { %v1578_v5 = vld [vmem:[#allocation3 + $0x28] sm:$0x1]  ;;  %v1888_v8 = vpack.c.bf16 %v1880_v1, %v1880_v1  ;;  %v1904_v13 = vrot.slane %v1886_v2, 1  ;;  %v1604_v0 = vshrl.u32 %v1584_v7, 16  ;;  %v1606_v15 = vshll.u32 %v1584_v7, 16  ;;  %v4167_v60 = vld [vmem:[#allocation9 + $0x1b8] sm:$0xff]  }
 0x429   : > { %v1586_v10 = vpack.c.bf16 %v1578_v5, %v1578_v5  ;;  %v1902_v17 = vrot.slane %v1887_v9, 1  ;;  %v1585_v42 = vpack.c.bf16 %v1577_v11, %v1577_v11  ;;  %v1882_v6 = vld [vmem:[#allocation3 + $0x38] sm:$0xfc]  ;;  %v1594_v29 = vshll.u32 %v1583_v41, 16  ;;  %v1881_v25 = vld [vmem:[#allocation3 + $0x30] sm:$0xfc] }
 0x42a   : > { %v1905_v16 = vrot.slane %v1888_v8, 1  ;;  %v1608_v19 = vrot.slane %v1606_v15, 1  ;;  %v1580_v21 = vld [vmem:[#allocation3 + $0x38] sm:$0xfe]  ;;  %v4862_v24 = vld [vmem:[#allocation3 + $0x40] sm:$0xff]  ;;  %v4169_v15 = vld [vmem:[#allocation9 + $0x1c8] sm:$0xff]  }
 0x42b   : > { %v1611_v18 = vshll.u32 %v1586_v10, 16  ;;  %v4858_v12 = vld [vmem:[#allocation3 + $0x48] sm:$0xff]  ;;  %v1903_v23 = vsel %vm1013_vm13, %v1901_v14, %v1902_v17  ;;  %v1599_v30 = vshll.u32 %v1585_v42, 16  ;;  %v1596_v35 = vrot.slane %v1594_v29, 1  ;;  %v1579_v28 = vld [vmem:[#allocation3 + $0x30] sm:$0xfe] }
 0x42c   : > { %v1906_v22 = vsel %vm1013_vm13, %v1904_v13, %v1905_v16  ;;  %v1609_v26 = vor.u32 %v1608_v19, %v1604_v0  ;;  %v1890_v37 = vpack.c.bf16 %v4858_v12, %v1882_v6  ;;  %v1588_v27 = vpack.c.bf16 %v4858_v12, %v1580_v21  ;;  %v1883_v43 = vld [vmem:[#allocation3 + $0x50] sm:$0x3]  ;;  %v4168_v11 = vld [vmem:[#allocation9 + $0x1c0] sm:$0xff]   ;;  %v1546_v13 = vld [vmem:[#allocation3 + $0x8] sm:$0xff] }
 0x42d   : > { %v1613_v31 = vrot.slane %v1611_v18, 1  ;;  %3690 = vmatprep.mubr.msk.bf16.mxu1 %vm229_vm0, %v1906_v22  ;;  %v1601_v32 = vrot.slane %v1599_v30, 1  ;;  %v1884_v33 = vld [vmem:[#allocation3 + $0x58] sm:$0x3]  ;;  %v1889_v44 = vpack.c.bf16 %v4862_v24, %v1881_v25  ;;  %v1597_v38 = vor.u32 %v1596_v35, %v1592_v20  ;;  %v1581_v45 = vld [vmem:[#allocation3 + $0x50] sm:$0x1] }
 0x42e   : > { %2026 = vmatmul.mubr.bf16.vlgmr.msra.gmra.mrb[24].mxu1 %v1903_v23  ;;  %v1582_v34 = vld [vmem:[#allocation3 + $0x58] sm:$0x1]  ;;  %v1892_v40 = vpack.c.bf16 %v1884_v33, %v1884_v33  ;;  %v1587_v46 = vpack.c.bf16 %v4862_v24, %v1579_v28  ;;  %v1630_v49 = vshll.u32 %v1588_v27, 16  ;;  %v1891_v50 = vpack.c.bf16 %v1883_v43, %v1883_v43  ;;  %v4170_v16 = vld [vmem:[#allocation9 + $0x1d0] sm:$0xff]   ;;  %v4172_v18 = vld [vmem:[#allocation9 + $0x1e0] sm:$0xff]  }
 0x42f   : > { %v1614_v36 = vsel %vm702_vm14, %v1609_v26, %v1613_v31  ;;  %v1590_v48 = vpack.c.bf16 %v1582_v34, %v1582_v34  ;;  %v1602_v51 = vsel %vm702_vm14, %v1597_v38, %v1601_v32  ;;  %v1910_v52 = vrot.slane %v1890_v37, 1  ;;  %v4171_v17 = vld [vmem:[#allocation9 + $0x1d8] sm:$0xff]   ;;  %v4174_v42 = vld [vmem:[#allocation9 + $0x1f0] sm:$0xff]   ;;  %v1545_v19 = vld [vmem:[#allocation3] sm:$0xff] }
 0x430   : > { %3668 = vmatprep.mubr.msk.bf16.mxu0 %vm229_vm0, %v1614_v36  ;;  %v1911_v53 = vrot.slane %v1892_v40, 1  ;;  %v1589_v54 = vpack.c.bf16 %v1581_v45, %v1581_v45  ;;  %v1628_v55 = vshrl.u32 %v1588_v27, 16  ;;  %v1632_v56 = vrot.slane %v1630_v49, 1  ;;  %v1550_v6 = vld [vmem:[#allocation3 + $0x38] sm:$0xff]  ;;  %v1549_v21 = vld [vmem:[#allocation3 + $0x30] sm:$0xff]  ;;  %v4175_v23 = vld [vmem:[#allocation9 + $0x288] sm:$0xff]  }
 0x431   : > { %1752 = vmatmul.mubr.bf16.vlgmr.msra.gmra.mrb[12].mxu0 %v1602_v51  ;;  %v1635_v57 = vshll.u32 %v1590_v48, 16  ;;  %v1908_v58 = vrot.slane %v1891_v50, 1  ;;  %v1907_v63 = vrot.slane %v1889_v44, 1  ;;  %v1618_v1 = vshll.u32 %v1587_v46, 16  ;;  %v4177_v31 = vld [vmem:[#allocation9 + $0x2d0] sm:$0xff]   ;;  %2383 = vmatpush1.bf16.msra.mxu1 %v4175_v23  ;;  %v4179_v25 = vld [vmem:[#allocation9 + $0x2d8] sm:$0xff]  }
 0x432   : > { %1829 = vmatpush1.bf16.msra.mxu0 %v4166_v39  ;;  %v1912_v59 = vsel %vm1013_vm13, %v1910_v52, %v1911_v53  ;;  %v1623_v2 = vshll.u32 %v1589_v54, 16  ;;  %v1633_v3 = vor.u32 %v1632_v56, %v1628_v55  ;;  %v1616_v7 = vshrl.u32 %v1587_v46, 16  ;;  %v4176_v30 = vld [vmem:[#allocation9 + $0x290] sm:$0xff]   ;;  %2384 = vmatprep.subr.bf16.mxu1 %v4411_v47  ;;  %v4183_v26 = vld [vmem:[#allocation9 + $0x2e8] sm:$0xff]   ;;  %v4186_v52 = vld [vmem:[#allocation9 + $0x2b8] sm:$0xff]  }
 0x433   : > { %1830 = vmatprep.subr.bf16.mxu0 %v4411_v47  ;;  %3691 = vmatprep.mubr.msk.bf16.mxu1 %vm229_vm0, %v1912_v59  ;;  %v1637_v4 = vrot.slane %v1635_v57, 1  ;;  %v1909_v5 = vsel %vm1013_vm13, %v1907_v63, %v1908_v58  ;;  %v1620_v41 = vrot.slane %v1618_v1, 1  ;;  %v1554_v0 = vpack.c.bf16 %v4846_v61, %v1546_v13  ;;  %v4173_v61 = vld [vmem:[#allocation9 + $0x1e8] sm:$0xff]   ;;  %v4184_v37 = vld [vmem:[#allocation9 + $0x2b0] sm:$0xff]   ;;  %v3692_v56 = vld [vmem:[#allocation11 + $0x3] ss:$0 sm:$0xff] }
 0x434   : > { %v1625_v8 = vrot.slane %v1623_v2, 1  ;;  %v1553_v20 = vpack.c.bf16 %v4848_v62, %v1545_v19  ;;  %v1556_v29 = vpack.c.bf16 %v4858_v12, %v1550_v6  ;;  %v1555_v22 = vpack.c.bf16 %v4862_v24, %v1549_v21  ;;  %v4178_v62 = vld [vmem:[#allocation9 + $0x298] sm:$0xff]   ;;  %v4181_v12 = vld [vmem:[#allocation9 + $0x2e0] sm:$0xff]   ;;  %v4182_v35 = vld [vmem:[#allocation9 + $0x2a8] sm:$0xff]  }
 0x435   : > { %v1638_v9 = vsel %vm702_vm14, %v1633_v3, %v1637_v4  ;;  %v1621_v10 = vor.u32 %v1620_v41, %v1616_v7  ;;  %2385 = vmatpush1.bf16.msra.mxu1 %v4176_v30  ;;  %v4180_v24 = vld [vmem:[#allocation9 + $0x2a0] sm:$0xff]   ;;  %v4185_v51 = vld [vmem:[#allocation9 + $0x2f0] sm:$0xff]   ;;  %v4187_v58 = vld [vmem:[#allocation9 + $0x2f8] sm:$0xff]  }
 0x436   : > { %2034 = vmatmul.mubr.bf16.gmra.mrb[28].mxu1 %v1909_v5  ;;  %1831 = vmatpush1.bf16.msra.mxu0 %v4167_v60  ;;  %v4188_v59 = vld [vmem:[#allocation9 + $0x2c0] sm:$0xff]   ;;  %v4190_v5 = vld [vmem:[#allocation9 + $0x2c8] sm:$0xff]   ;;  %v4193_v19 = vld [vmem:[#allocation9 + $0x310] sm:$0xff]  }
 0x437   : > { %3669 = vmatprep.mubr.msk.bf16.mxu0 %vm229_vm0, %v1638_v9  ;;  %1832 = vmatprep.subr.bf16.mxu0 %v4411_v47  ;;  %v1626_v14 = vsel %vm702_vm14, %v1621_v10, %v1625_v8  ;;  %v4189_v4 = vld [vmem:[#allocation9 + $0x300] sm:$0xff]  }
 0x438   : > { %2386 = vmatprep.subr.bf16.mxu1 %v4411_v47 }
 0x439   : > { %1760 = vmatmul.mubr.bf16.gmra.mrb[16].mxu0 %v1626_v14  ;;  %2387 = vmatpush1.bf16.msra.mxu1 %v4178_v62  ;;  %v4921_v62 = vld [vmem:[#allocation4 + $0x18] sm:$0xff] }
 0x43a   : > { %1833 = vmatpush1.bf16.msra.mxu0 %v4168_v11  ;;  %3679 = vmatprep.mubr.msk.bf16.mxu0 %vm229_vm0, %v1554_v0  ;;  %v4191_v0 = vld [vmem:[#allocation9 + $0x308] sm:$0xff]  }
 0x43b   : > { %1834 = vmatprep.subr.bf16.mxu0 %v4411_v47  ;;  %2388 = vmatprep.subr.bf16.mxu1 %v4411_v47 }
 0x43d   : > { %2389 = vmatpush1.bf16.msra.mxu1 %v4180_v24  ;;  %v2644_v24 = vld [vmem:[#allocation4 + $0x8] sm:$0xfe] }
 0x43e   : > { %1835 = vmatpush1.bf16.msra.mxu0 %v4169_v15  ;;  %2390 = vmatprep.subr.bf16.mxu1 %v4411_v47 }
 0x43f   : > { %1836 = vmatprep.subr.bf16.mxu0 %v4411_v47 }
 0x441   : > { %2391 = vmatpush1.bf16.msra.mxu1 %v4182_v35  ;;  %v2646_v35 = vld [vmem:[#allocation4 + $0x28] sm:$0x1] }
 0x442   : > { %1837 = vmatpush1.bf16.msra.mxu0 %v4170_v16  ;;  %2392 = vmatprep.subr.bf16.mxu1 %v4411_v47 }
 0x443   : > { %1838 = vmatprep.subr.bf16.mxu0 %v4411_v47 }
 0x445   : > { %2393 = vmatpush1.bf16.msra.mxu1 %v4184_v37 }
 0x446   : > { %1839 = vmatpush1.bf16.msra.mxu0 %v4171_v17  ;;  %2394 = vmatprep.subr.bf16.mxu1 %v4411_v47 }
 0x447   : > { %1840 = vmatprep.subr.bf16.mxu0 %v4411_v47 }
 0x449   : > { %2395 = vmatpush1.bf16.msra.mxu1 %v4186_v52 }
 0x44a   : > { %1841 = vmatpush1.bf16.msra.mxu0 %v4172_v18  ;;  %2396 = vmatprep.subr.bf16.mxu1 %v4411_v47 }
 0x44b   : > { %1842 = vmatprep.subr.bf16.mxu0 %v4411_v47 }
 0x44d   : > { %2397 = vmatpush1.bf16.msra.mxu1 %v4188_v59 }
 0x44e   : > { %1843 = vmatpush1.bf16.msra.mxu0 %v4173_v61  ;;  %2398 = vmatprep.subr.bf16.mxu1 %v4411_v47 }
 0x44f   : > { %1844 = vmatprep.subr.bf16.mxu0 %v4411_v47 }
 0x451   : > { %2399 = vmatpush1.bf16.msra.mxu1 %v4190_v5 }
 0x452   : > { %1845 = vmatpush1.bf16.msra.mxu0 %v4174_v42  ;;  %2787 = vmatprep.subr.bf16.mxu1 %v4411_v47 }
 0x453   : > { %2273 = vmatprep.subr.bf16.mxu0 %v4411_v47 }
 0x455   : > { %1861 = vmatmul.mubr.bf16.vlgmr.msra.gmra.mrb[20].mxu0 %v1553_v20 }
 0x456   : > { %3680 = vmatprep.mubr.msk.bf16.mxu0 %vm229_vm0, %v1556_v29  ;;  %2274 = vmatpush1.bf16.msra.mxu0 %v4177_v31 }
 0x457   : > { %2275 = vmatprep.subr.bf16.mxu0 %v4411_v47 }
 0x45a   : > { %2276 = vmatpush1.bf16.msra.mxu0 %v4179_v25 }
 0x45b   : > { %2277 = vmatprep.subr.bf16.mxu0 %v4411_v47 }
 0x45d   : > { %1869 = vmatmul.mubr.bf16.gmra.mrb[24].mxu0 %v1555_v22 }
 0x45e   : > { %2278 = vmatpush1.bf16.msra.mxu0 %v4181_v12 }
 0x45f   : > { %2279 = vmatprep.subr.bf16.mxu0 %v4411_v47 }
 0x462   : > { %2280 = vmatpush1.bf16.msra.mxu0 %v4183_v26  ;;  %v2652_v26 = vpack.c.bf16 %v4921_v62, %v2644_v24  ;;  %v4197_v24 = vld [vmem:[#allocation9 + $0x320] sm:$0xff]  }
 0x463   : > { %2281 = vmatprep.subr.bf16.mxu0 %v4411_v47 }
 0x466   : > { %2282 = vmatpush1.bf16.msra.mxu0 %v4185_v51 }
 0x467   : > { %2283 = vmatprep.subr.bf16.mxu0 %v4411_v47 }
 0x46a   : > { %2284 = vmatpush1.bf16.msra.mxu0 %v4187_v58 }
 0x46b   : > { %2285 = vmatprep.subr.bf16.mxu0 %v4411_v47 }
 0x46e   : > { %2286 = vmatpush1.bf16.msra.mxu0 %v4189_v4 }
 0x46f   : > { %2287 = vmatprep.subr.bf16.mxu0 %v4411_v47 }
 0x472   : > { %2288 = vmatpush1.bf16.msra.mxu0 %v4191_v0 }
 0x473   : > { %2289 = vmatprep.subr.bf16.mxu0 %v4411_v47 }
 0x476   : > { %2290 = vmatpush1.bf16.msra.mxu0 %v4193_v19 }
 0x477   : > { %2547 = vmatprep.subr.bf16.mxu0 %v4411_v47 }
 0x501   : > { %v2027_v27 = vpop.f32.mrb[24].mxu1 }
 0x502   : > { %v2029_v28 = vpop.f32.mrb[25].mxu1 }
 0x503   : > { %v2030_v32 = vpop.f32.mrb[26].mxu1 }
 0x504   : > { %v2032_v33 = vpop.f32.mrb[27].mxu1  ;;  %v1753_v34 = vpop.f32.mrb[12].mxu0 }
 0x505   : > { %v1755_v44 = vpop.f32.mrb[13].mxu0  ;;  %v2654_v33 = vpack.c.bf16 %v2646_v35, %v2646_v35 }
 0x506   : > { %v1756_v36 = vpop.f32.mrb[14].mxu0 }
 0x507   : > { %v1758_v38 = vpop.f32.mrb[15].mxu0 }
 0x509   : > { %v2035_v39 = vpop.f32.mrb[28].mxu1 }
 0x50a   : > { %v2037_v40 = vpop.f32.mrb[29].mxu1 }
 0x50b   : > { %v2038_v43 = vpop.f32.mrb[30].mxu1 }
 0x50c   : > { %v2040_v45 = vpop.f32.mrb[31].mxu1  ;;  %v1761_v46 = vpop.f32.mrb[16].mxu0 }
 0x50d   : > { %v1763_v48 = vpop.f32.mrb[17].mxu0 }
 0x50e   : > { %v1764_v49 = vpop.f32.mrb[18].mxu0 }
 0x50f   : > { %v1766_v50 = vpop.f32.mrb[19].mxu0 }
 0x528   : > { %v1862_v53 = vpop.f32.mrb[20].mxu0 }
 0x529   : > { %v1863_v54 = vadd.f32 %v1862_v53, %v1753_v34  ;;  %v1864_v55 = vpop.f32.mrb[21].mxu0  ;;  %v2674_v34 = vshll.u32 %v2652_v26, 16 }
 0x52a   : > { %v1865_v57 = vpop.f32.mrb[22].mxu0 }
 0x52b   : > { %v2042_v60 = vadd.f32 %v2027_v27, %v1863_v54  ;;  %v1866_v63 = vadd.f32 %v1865_v57, %v1756_v36  ;;  %v1867_v1 = vpop.f32.mrb[23].mxu0  ;;  %v2679_v57 = vshll.u32 %v2654_v33, 16 }
 0x52d   : > { %v2051_v2 = vadd.f32 %v3692_v56, %v2042_v60  ;;  %v2043_v3 = vadd.f32 %v2030_v32, %v1866_v63  ;;  %v2672_v60 = vshrl.u32 %v2652_v26, 16  ;;  %v4194_v63 = vld [vmem:[#allocation9 + $0x3b0] sm:$0xff]   ;;  %v2681_v0 = vrot.slane %v2679_v57, 1  ;;  %v2643_v57 = vld [vmem:[#allocation4] sm:$0xfe] }
 0x52f   : > { %v2052_v7 = vadd.f32 %v3692_v56, %v2043_v3  ;;  %v2055_v41 = vmax.f32 %v2051_v2, 0.0 }
 0x530   : > { %v1870_v8 = vpop.f32.mrb[24].mxu0 }
 0x531   : > { %v2056_v9 = vmax.f32 %v2052_v7, 0.0  ;;  %v1871_v10 = vadd.f32 %v1870_v8, %v1761_v46  ;;  %v1872_v11 = vpop.f32.mrb[25].mxu0  ;;  %v2063_v13 = vrot.slane %v2055_v41, 7  ;;  %v4192_v46 = vld [vmem:[#allocation9 + $0x3a8] sm:$0xff]   ;;  %v4195_v41 = vld [vmem:[#allocation9 + $0x318] sm:$0xff]  }
 0x532   : > { %v1873_v14 = vpop.f32.mrb[26].mxu0 }
 0x533   : > { %v2064_v15 = vrot.slane %v2056_v9, 7  ;;  %v2044_v16 = vadd.f32 %v2035_v39, %v1871_v10  ;;  %v1874_v17 = vadd.f32 %v1873_v14, %v1764_v49  ;;  %v1875_v18 = vpop.f32.mrb[27].mxu0  ;;  %2069 = vrot.lane.b32.xlu0 %v2063_v13, %s4412_s20 }
 0x535   : > { %v2053_v61 = vadd.f32 %v3692_v56, %v2044_v16  ;;  %v2045_v42 = vadd.f32 %v2038_v43, %v1874_v17  ;;  %v2065_v6 = vsel %vm613_vm6, %v2063_v13, %v2064_v15  ;;  %v4196_v13 = vld [vmem:[#allocation9 + $0x3b8] sm:$0xff]  }
 0x536   : > { %2071 = vrot.lane.b32.xlu1 %v2065_v6, %s4412_s20 }
 0x537   : > { %v2054_v20 = vadd.f32 %v3692_v56, %v2045_v42  ;;  %2073 = vrot.lane.b32.xlu0 %v2064_v15, %s4412_s20  ;;  %v2057_v29 = vmax.f32 %v2053_v61, 0.0  ;;  %v2676_v56 = vrot.slane %v2674_v34, 1 }
 0x539   : > { %v2058_v21 = vmax.f32 %v2054_v20, 0.0  ;;  %v2066_v22 = vrot.slane %v2057_v29, 7  ;;  %v2677_v14 = vor.u32 %v2676_v56, %v2672_v60  ;;  %v4201_v56 = vld [vmem:[#allocation9 + $0x330] sm:$0xff]   ;;  %v2648_v60 = vld [vmem:[#allocation4 + $0x38] sm:$0xfe] }
 0x53b   : > { %v2067_v23 = vrot.slane %v2058_v21, 7  ;;  %2075 = vrot.lane.b32.xlu1 %v2066_v22, %s4412_s20 }
 0x53d   : > { %v2068_v31 = vsel %vm613_vm6, %v2066_v22, %v2067_v23 }
 0x53e   : > { %2077 = vrot.lane.b32.xlu0 %v2068_v31, %s4412_s20 }
 0x53f   : > { %2079 = vrot.lane.b32.xlu1 %v2067_v23, %s4412_s20 }
 0x5a5   : > { %v2070_v30 = vpop.permute.xlu0 %2069 }
 0x5a6   : > { %2087 = vst.msk [vmem:[#allocation3] sm:$0xfe] %vm638_vm7, %v2070_v30 }
 0x5a7   : > { %2088 = vst.msk [vmem:[#allocation3 + $0x8] sm:$0xfe] %vm640_vm8, %v2070_v30  ;;  %v2682_v30 = vsel %vm702_vm14, %v2677_v14, %v2681_v0  ;;  %v4206_v14 = vld [vmem:[#allocation9 + $0x3e0] sm:$0xff]  }
 0x5a8   : > { %v2072_v25 = vpop.permute.xlu1 %2071 }
 0x5a9   : > { %2089 = vst.msk [vmem:[#allocation3 + $0x10] sm:$0xff] %vm642_vm9, %v2072_v25  ;;  %v2074_v12 = vpop.permute.xlu0 %2073 }
 0x5aa   : > { %2090 = vst.msk [vmem:[#allocation3 + $0x18] sm:$0xff] %vm644_vm10, %v2072_v25 }
 0x5ab   : > { %2091 = vst.msk [vmem:[#allocation3 + $0x20] sm:$0x1] %vm646_vm11, %v2074_v12 }
 0x5ac   : > { %2092 = vst.msk [vmem:[#allocation3 + $0x28] sm:$0x1] %vm648_vm12, %v2074_v12 }
 0x5ad   : > { %v2076_v37 = vpop.permute.xlu1 %2075  ;;  %v2099_v28 = vld [vmem:[#allocation3] sm:$0xff] }
 0x5ae   : > { %2093 = vst.msk [vmem:[#allocation3 + $0x30] sm:$0xfe] %vm638_vm7, %v2076_v37  ;;  %v2100_v27 = vld [vmem:[#allocation3 + $0x8] sm:$0xff]  ;;  %v2129_v39 = vld [vmem:[#allocation3] sm:$0xfe] }
 0x5af   : > { %2094 = vst.msk [vmem:[#allocation3 + $0x38] sm:$0xfe] %vm640_vm8, %v2076_v37  ;;  %v2130_v32 = vld [vmem:[#allocation3 + $0x8] sm:$0xfe] }
 0x5b0   : > { %v2078_v44 = vpop.permute.xlu0 %2077  ;;  %v4932_v38 = vld [vmem:[#allocation3 + $0x10] sm:$0xff]  ;;  %v2432_v12 = vld [vmem:[#allocation3 + $0x8] sm:$0xfc] }
 0x5b1   : > { %v4930_v36 = vld [vmem:[#allocation3 + $0x18] sm:$0xff]  ;;  %2095 = vst.msk [vmem:[#allocation3 + $0x40] sm:$0xff] %vm642_vm9, %v2078_v44  ;;  %v2080_v40 = vpop.permute.xlu1 %2079  ;;  %v2107_v45 = vpack.c.bf16 %v4932_v38, %v2099_v28  ;;  %v2137_v51 = vpack.c.bf16 %v4932_v38, %v2129_v39  ;;  %v4198_v28 = vld [vmem:[#allocation9 + $0x3c0] sm:$0xff]  }
 0x5b2   : > { %2096 = vst.msk [vmem:[#allocation3 + $0x48] sm:$0xff] %vm644_vm10, %v2078_v44  ;;  %v2108_v43 = vpack.c.bf16 %v4930_v36, %v2100_v27  ;;  %v2138_v49 = vpack.c.bf16 %v4930_v36, %v2130_v32  ;;  %v2131_v50 = vld [vmem:[#allocation3 + $0x20] sm:$0x1]  ;;  %v2440_v37 = vpack.c.bf16 %v4930_v36, %v2432_v12  ;;  %v4209_v12 = vld [vmem:[#allocation9 + $0x350] sm:$0xff]  }
 0x5b3   : > { %v2132_v48 = vld [vmem:[#allocation3 + $0x28] sm:$0x1]  ;;  %2097 = vst.msk [vmem:[#allocation3 + $0x50] sm:$0x1] %vm646_vm11, %v2080_v40  ;;  %v2139_v53 = vpack.c.bf16 %v2131_v50, %v2131_v50  ;;  %v2148_v55 = vshll.u32 %v2137_v51, 16  ;;  %v2146_v3 = vshrl.u32 %v2137_v51, 16 }
 0x5b4   : > { %2098 = vst.msk [vmem:[#allocation3 + $0x58] sm:$0x1] %vm648_vm12, %v2080_v40  ;;  %v2140_v52 = vpack.c.bf16 %v2132_v48, %v2132_v48  ;;  %3713 = vmatprep.mubr.msk.bf16.mxu1 %vm229_vm0, %v2108_v43  ;;  %v2160_v54 = vshll.u32 %v2138_v49, 16  ;;  %v2158_v1 = vshrl.u32 %v2138_v49, 16  ;;  %v2434_v15 = vld [vmem:[#allocation3 + $0x28] sm:$0x3] }
 0x5b5   : > { %2415 = vmatmul.mubr.bf16.vlgmr.msra.gmra.mrb[32].mxu1 %v2107_v45  ;;  %v2153_v59 = vshll.u32 %v2139_v53, 16  ;;  %v2150_v4 = vrot.slane %v2148_v55, 1  ;;  %v2103_v11 = vld [vmem:[#allocation3 + $0x30] sm:$0xff]  ;;  %v2442_v27 = vpack.c.bf16 %v2434_v15, %v2434_v15  ;;  %v2458_v36 = vrot.slane %v2440_v37, 1  ;;  %v4199_v50 = vld [vmem:[#allocation9 + $0x328] sm:$0xff]  }
 0x5b6   : > { %v2165_v58 = vshll.u32 %v2140_v52, 16  ;;  %2788 = vmatpush1.bf16.msra.mxu1 %v4192_v46  ;;  %v2162_v2 = vrot.slane %v2160_v54, 1  ;;  %v2104_v10 = vld [vmem:[#allocation3 + $0x38] sm:$0xff]  ;;  %v2133_v18 = vld [vmem:[#allocation3 + $0x30] sm:$0xfe]  ;;  %v4200_v52 = vld [vmem:[#allocation9 + $0x3c8] sm:$0xff]  }
 0x5b7   : > { %2789 = vmatprep.subr.bf16.mxu1 %v4411_v47  ;;  %v2155_v7 = vrot.slane %v2153_v59, 1  ;;  %v2151_v9 = vor.u32 %v2150_v4, %v2146_v3  ;;  %v2134_v20 = vld [vmem:[#allocation3 + $0x38] sm:$0xfe]  ;;  %v2459_v48 = vrot.slane %v2442_v27, 1  ;;  %v4968_v55 = vld [vmem:[#allocation4 + $0x10] sm:$0xff]  ;;  %v4972_v59 = vld [vmem:[#allocation4 + $0x48] sm:$0xff] }
 0x5b8   : > { %v2167_v5 = vrot.slane %v2165_v58, 1  ;;  %v2163_v8 = vor.u32 %v2162_v2, %v2158_v1  ;;  %v4946_v17 = vld [vmem:[#allocation3 + $0x40] sm:$0xff]  ;;  %v4202_v58 = vld [vmem:[#allocation9 + $0x3d0] sm:$0xff]   ;;  %v4203_v2 = vld [vmem:[#allocation9 + $0x338] sm:$0xff]   ;;  %v2656_v3 = vpack.c.bf16 %v4972_v59, %v2648_v60 }
 0x5b9   : > { %v4944_v16 = vld [vmem:[#allocation3 + $0x48] sm:$0xff]  ;;  %v2156_v42 = vsel %vm702_vm14, %v2151_v9, %v2155_v7  ;;  %v2109_v19 = vpack.c.bf16 %v4946_v17, %v2103_v11  ;;  %v2141_v22 = vpack.c.bf16 %v4946_v17, %v2133_v18  ;;  %v2460_v54 = vsel %vm1013_vm13, %v2458_v36, %v2459_v48  ;;  %v2645_v1 = vld [vmem:[#allocation4 + $0x20] sm:$0x1]  ;;  %v4204_v4 = vld [vmem:[#allocation9 + $0x3d8] sm:$0xff]  }
 0x5ba   : > { %2790 = vmatpush1.bf16.msra.mxu1 %v4194_v63  ;;  %v2168_v61 = vsel %vm702_vm14, %v2163_v8, %v2167_v5  ;;  %v2110_v6 = vpack.c.bf16 %v4944_v16, %v2104_v10  ;;  %v2135_v21 = vld [vmem:[#allocation3 + $0x50] sm:$0x1]  ;;  %v2142_v23 = vpack.c.bf16 %v4944_v16, %v2134_v20  ;;  %v2651_v63 = vpack.c.bf16 %v4968_v55, %v2643_v57  ;;  %v2650_v5 = vld [vmem:[#allocation4 + $0x58] sm:$0x1]  ;;  %v4205_v8 = vld [vmem:[#allocation9 + $0x340] sm:$0xff]  }
 0x5bb   : > { %v2136_v29 = vld [vmem:[#allocation3 + $0x58] sm:$0x1]  ;;  %3702 = vmatprep.mubr.msk.bf16.mxu0 %vm229_vm0, %v2168_v61  ;;  %2791 = vmatprep.subr.bf16.mxu1 %v4411_v47  ;;  %v2143_v25 = vpack.c.bf16 %v2135_v21, %v2135_v21  ;;  %v2172_v32 = vshll.u32 %v2141_v22, 16  ;;  %v2170_v40 = vshrl.u32 %v2141_v22, 16  ;;  %v2653_v7 = vpack.c.bf16 %v2645_v1, %v2645_v1  ;;  %v4979_v11 = vld [vmem:[#allocation4 + $0x40] sm:$0xff]  ;;  %v4207_v61 = vld [vmem:[#allocation9 + $0x348] sm:$0xff]  }
 0x5bc   : > { %v2144_v31 = vpack.c.bf16 %v2136_v29, %v2136_v29  ;;  %2306 = vmatmul.mubr.bf16.vlgmr.msra.gmra.mrb[28].mxu0 %v2156_v42  ;;  %3714 = vmatprep.mubr.msk.bf16.mxu1 %vm229_vm0, %v2110_v6  ;;  %v2184_v26 = vshll.u32 %v2142_v23, 16  ;;  %v2182_v34 = vshrl.u32 %v2142_v23, 16  ;;  %v2658_v9 = vpack.c.bf16 %v2650_v5, %v2650_v5  ;;  %v2649_v20 = vld [vmem:[#allocation4 + $0x50] sm:$0x1]  ;;  %v4208_v29 = vld [vmem:[#allocation9 + $0x3e8] sm:$0xff]   ;;  %v4211_v36 = vld [vmem:[#allocation9 + $0x358] sm:$0xff]  }
 0x5bd   : > { %2548 = vmatpush1.bf16.msra.mxu0 %v4195_v41  ;;  %2423 = vmatmul.mubr.bf16.gmra.mrb[36].mxu1 %v2109_v19  ;;  %v2177_v33 = vshll.u32 %v2143_v25, 16  ;;  %v2174_v43 = vrot.slane %v2172_v32, 1  ;;  %v2662_v41 = vshll.u32 %v2651_v63, 16  ;;  %v2698_v10 = vshll.u32 %v2656_v3, 16  ;;  %v4210_v37 = vld [vmem:[#allocation9 + $0x3f0] sm:$0xff]   ;;  %v4213_v60 = vld [vmem:[#allocation9 + $0x360] sm:$0xff]  }
 0x5be   : > { %v2189_v35 = vshll.u32 %v2144_v31, 16  ;;  %2792 = vmatpush1.bf16.msra.mxu1 %v4196_v13  ;;  %3736 = vmatprep.mubr.msk.bf16.mxu1 %vm229_vm0, %v2682_v30  ;;  %v2186_v44 = vrot.slane %v2184_v26, 1  ;;  %v2647_v13 = vld [vmem:[#allocation4 + $0x30] sm:$0xfe]  ;;  %v2667_v15 = vshll.u32 %v2653_v7, 16  ;;  %v2660_v42 = vshrl.u32 %v2651_v63, 16 }
 0x5bf   : > { %2549 = vmatprep.subr.bf16.mxu0 %v4411_v47  ;;  %2793 = vmatprep.subr.bf16.mxu1 %v4411_v47  ;;  %v2179_v45 = vrot.slane %v2177_v33, 1  ;;  %v2175_v49 = vor.u32 %v2174_v43, %v2170_v40  ;;  %v2664_v0 = vrot.slane %v2662_v41, 1  ;;  %v2655_v18 = vpack.c.bf16 %v4979_v11, %v2647_v13  ;;  %v2433_v31 = vld [vmem:[#allocation3 + $0x20] sm:$0x3]  ;;  %v2431_v27 = vld [vmem:[#allocation3] sm:$0xfc] }
 0x5c0   : > { %v2191_v39 = vrot.slane %v2189_v35, 1  ;;  %v2187_v46 = vor.u32 %v2186_v44, %v2182_v34  ;;  %v2700_v6 = vrot.slane %v2698_v10, 1  ;;  %v2703_v19 = vshll.u32 %v2658_v9, 16  ;;  %v2438_v35 = vld [vmem:[#allocation3 + $0x58] sm:$0x3]  ;;  %v4214_v63 = vld [vmem:[#allocation9 + $0x400] sm:$0xff]  }
 0x5c1   : > { %2550 = vmatpush1.bf16.msra.mxu0 %v4197_v24  ;;  %v2180_v53 = vsel %vm702_vm14, %v2175_v49, %v2179_v45  ;;  %v2665_v21 = vor.u32 %v2664_v0, %v2660_v42  ;;  %v2669_v22 = vrot.slane %v2667_v15, 1  ;;  %v2696_v23 = vshrl.u32 %v2656_v3, 16  ;;  %v2436_v34 = vld [vmem:[#allocation3 + $0x38] sm:$0xfc]  ;;  %v2948_v44 = vld [vmem:[#allocation4 + $0x28] sm:$0x3] }
 0x5c2   : > { %2794 = vmatpush1.bf16.msra.mxu1 %v4198_v28  ;;  %2551 = vmatprep.subr.bf16.mxu0 %v4411_v47  ;;  %v2192_v51 = vsel %vm702_vm14, %v2187_v46, %v2191_v39  ;;  %v2657_v30 = vpack.c.bf16 %v2649_v20, %v2649_v20  ;;  %v2686_v25 = vshll.u32 %v2655_v18, 16  ;;  %v2705_v26 = vrot.slane %v2703_v19, 1  ;;  %v2946_v48 = vld [vmem:[#allocation4 + $0x8] sm:$0xfc]  ;;  %v4212_v49 = vld [vmem:[#allocation9 + $0x3f8] sm:$0xff]   ;;  %v4217_v0 = vld [vmem:[#allocation9 + $0x370] sm:$0xff]  }
 0x5c3   : > { %2795 = vmatprep.subr.bf16.mxu1 %v4411_v47  ;;  %3703 = vmatprep.mubr.msk.bf16.mxu0 %vm229_vm0, %v2192_v51  ;;  %v2701_v24 = vor.u32 %v2700_v6, %v2696_v23  ;;  %v2670_v28 = vsel %vm702_vm14, %v2665_v21, %v2669_v22  ;;  %v2439_v32 = vpack.c.bf16 %v4932_v38, %v2431_v27  ;;  %v2435_v3 = vld [vmem:[#allocation3 + $0x30] sm:$0xfc]  ;;  %v4215_v10 = vld [vmem:[#allocation9 + $0x368] sm:$0xff]   ;;  %v4219_v6 = vld [vmem:[#allocation9 + $0x378] sm:$0xff]  }
 0x5c4   : > { %2314 = vmatmul.mubr.bf16.gmra.mrb[32].mxu0 %v2180_v53  ;;  %v2441_v33 = vpack.c.bf16 %v2433_v31, %v2433_v31  ;;  %v2444_v39 = vpack.c.bf16 %v4944_v16, %v2436_v34  ;;  %v2446_v40 = vpack.c.bf16 %v2438_v35, %v2438_v35  ;;  %v2688_v43 = vrot.slane %v2686_v25, 1  ;;  %v4216_v13 = vld [vmem:[#allocation9 + $0x408] sm:$0xff]   ;;  %v4220_v19 = vld [vmem:[#allocation9 + $0x418] sm:$0xff]   ;;  %v4221_v20 = vld [vmem:[#allocation9 + $0x380] sm:$0xff]  }
 0x5c5   : > { %2552 = vmatpush1.bf16.msra.mxu0 %v4199_v50  ;;  %3724 = vmatprep.mubr.msk.bf16.mxu0 %vm229_vm0, %v2460_v54  ;;  %v2691_v45 = vshll.u32 %v2657_v30, 16  ;;  %v2706_v46 = vsel %vm702_vm14, %v2701_v24, %v2705_v26  ;;  %v2684_v50 = vshrl.u32 %v2655_v18, 16  ;;  %v2954_v38 = vpack.c.bf16 %v4921_v62, %v2946_v48  ;;  %v2614_v15 = vld [vmem:[#allocation4 + $0x8] sm:$0xff]  ;;  %v4218_v18 = vld [vmem:[#allocation9 + $0x410] sm:$0xff]   ;;  %v2952_v23 = vld [vmem:[#allocation4 + $0x58] sm:$0x3] }
 0x5c6   : > { %2796 = vmatpush1.bf16.msra.mxu1 %v4200_v52  ;;  %2553 = vmatprep.subr.bf16.mxu0 %v4411_v47  ;;  %v2956_v51 = vpack.c.bf16 %v2948_v44, %v2948_v44  ;;  %v2455_v16 = vrot.slane %v2439_v32, 1  ;;  %v2456_v52 = vrot.slane %v2441_v33, 1  ;;  %v2464_v53 = vrot.slane %v2444_v39, 1  ;;  %v4223_v21 = vld [vmem:[#allocation9 + $0x388] sm:$0xff]   ;;  %v2945_v31 = vld [vmem:[#allocation4] sm:$0xfc] }
 0x5c7   : > { %2797 = vmatprep.subr.bf16.mxu1 %v4411_v47  ;;  %v2465_v54 = vrot.slane %v2446_v40, 1  ;;  %v2693_v57 = vrot.slane %v2691_v45, 1  ;;  %v2972_v1 = vrot.slane %v2954_v38, 1  ;;  %v2443_v5 = vpack.c.bf16 %v4946_v17, %v2435_v3  ;;  %v4224_v22 = vld [vmem:[#allocation9 + $0x428] sm:$0xff]   ;;  %v4225_v26 = vld [vmem:[#allocation9 + $0x390] sm:$0xff]   ;;  %v4227_v34 = vld [vmem:[#allocation9 + $0x398] sm:$0xff]  }
 0x5c8   : > { %v2622_v42 = vpack.c.bf16 %v4921_v62, %v2614_v15  ;;  %v2947_v62 = vld [vmem:[#allocation4 + $0x20] sm:$0x3]  ;;  %v2953_v30 = vpack.c.bf16 %v4968_v55, %v2945_v31  ;;  %v2960_v24 = vpack.c.bf16 %v2952_v23, %v2952_v23  ;;  %v4226_v35 = vld [vmem:[#allocation9 + $0x430] sm:$0xff]  }
 0x5c9   : > { %2554 = vmatpush1.bf16.msra.mxu0 %v4201_v56  ;;  %v2689_v56 = vor.u32 %v2688_v43, %v2684_v50  ;;  %v2466_v41 = vsel %vm1013_vm13, %v2464_v53, %v2465_v54  ;;  %v2461_v17 = vrot.slane %v2443_v5, 1  ;;  %v2955_v25 = vpack.c.bf16 %v2947_v62, %v2947_v62  ;;  %v2951_v33 = vld [vmem:[#allocation4 + $0x50] sm:$0x3]  ;;  %v2949_v39 = vld [vmem:[#allocation4 + $0x30] sm:$0xfc]  ;;  %v4229_v48 = vld [vmem:[#allocation9 + $0x45c] sm:$0xff]  }
 0x5ca   : > { %2798 = vmatpush1.bf16.msra.mxu1 %v4202_v58  ;;  %2555 = vmatprep.subr.bf16.mxu0 %v4411_v47  ;;  %v2437_v58 = vld [vmem:[#allocation3 + $0x50] sm:$0x3]  ;;  %v2969_v27 = vrot.slane %v2953_v30, 1  ;;  %v2979_v32 = vrot.slane %v2960_v24, 1  ;;  %v2959_v43 = vpack.c.bf16 %v2951_v33, %v2951_v33  ;;  %v2618_v50 = vld [vmem:[#allocation4 + $0x38] sm:$0xff]  ;;  %v2613_v38 = vld [vmem:[#allocation4] sm:$0xff] }
 0x5cb   : > { %2799 = vmatprep.subr.bf16.mxu1 %v4411_v47  ;;  %v2445_v7 = vpack.c.bf16 %v2437_v58, %v2437_v58  ;;  %v2624_v53 = vpack.c.bf16 %v4972_v59, %v2618_v50  ;;  %v3145_v3 = vld [vmem:[#allocation2 + $0x21] sm:$0xff]  ;;  %v4243_v62 = vld [vmem:[#allocation9 + $0x4a0] ss:$0 sps:$4 sm:$0xff]  }
 0x5cc   : > { %v3327_v15 = vld [vmem:[#allocation2 + $0x2] sm:$0xff] }
 0x5cd   : > { %2556 = vmatpush1.bf16.msra.mxu0 %v4203_v2  ;;  %v2973_v2 = vrot.slane %v2956_v51, 1  ;;  %v3330_v23 = vld [vmem:[#allocation2 + $0x22] sm:$0xff] }
 0x5ce   : > { %2800 = vmatpush1.bf16.msra.mxu1 %v4204_v4  ;;  %2557 = vmatprep.subr.bf16.mxu0 %v4411_v47  ;;  %v2457_v4 = vsel %vm1013_vm13, %v2455_v16, %v2456_v52  ;;  %v2621_v16 = vpack.c.bf16 %v4968_v55, %v2613_v38  ;;  %v4230_v52 = vld [vmem:[#allocation9 + $0x464] sm:$0xff]   ;;  %v3142_v55 = vld [vmem:[#allocation2 + $0x1] sm:$0xff] }
 0x5cf   : > { %2801 = vmatprep.subr.bf16.mxu1 %v4411_v47  ;;  %v2974_v9 = vsel %vm1013_vm13, %v2972_v1, %v2973_v2  ;;  %v4234_v2 = vld [vmem:[#allocation9 + $0x438] sm:$0xff]  }
 0x5d1   : > { %2558 = vmatpush1.bf16.msra.mxu0 %v4205_v8  ;;  %v2694_v8 = vsel %vm702_vm14, %v2689_v56, %v2693_v57  ;;  %v2617_v56 = vld [vmem:[#allocation4 + $0x30] sm:$0xff]  ;;  %v3143_v57 = vld [vmem:[#allocation2 + $0x9] sm:$0xff] }
 0x5d2   : > { %2802 = vmatpush1.bf16.msra.mxu1 %v4206_v14  ;;  %2559 = vmatprep.subr.bf16.mxu0 %v4411_v47  ;;  %v2462_v14 = vrot.slane %v2445_v7, 1  ;;  %v2623_v58 = vpack.c.bf16 %v4979_v11, %v2617_v56  ;;  %v3127_v7 = vld [vmem:[#allocation2] sm:$0xff] }
 0x5d3   : > { %2803 = vmatprep.subr.bf16.mxu1 %v4411_v47 }
 0x5d5   : > { %2560 = vmatpush1.bf16.msra.mxu0 %v4207_v61  ;;  %v2463_v61 = vsel %vm1013_vm13, %v2461_v17, %v2462_v14  ;;  %v4239_v14 = vld [vmem:[#allocation9 + $0x480] sm:$0xff]  }
 0x5d6   : > { %2804 = vmatpush1.bf16.msra.mxu1 %v4208_v29  ;;  %2561 = vmatprep.subr.bf16.mxu0 %v4411_v47  ;;  %v4222_v29 = vld [vmem:[#allocation9 + $0x420] sm:$0xff]  }
 0x5d7   : > { %3061 = vmatprep.subr.bf16.mxu1 %v4411_v47 }
 0x5d9   : > { %2562 = vmatpush1.bf16.msra.mxu0 %v4209_v12  ;;  %2820 = vmatmul.mubr.bf16.vlgmr.msra.gmra.mrb[40].mxu1 %v2670_v28  ;;  %v2950_v12 = vld [vmem:[#allocation4 + $0x38] sm:$0xfc]  ;;  %v2970_v28 = vrot.slane %v2955_v25, 1 }
 0x5da   : > { %3737 = vmatprep.mubr.msk.bf16.mxu1 %vm229_vm0, %v2706_v46  ;;  %3062 = vmatpush1.bf16.msra.mxu1 %v4210_v37  ;;  %v2958_v37 = vpack.c.bf16 %v4972_v59, %v2950_v12  ;;  %v4228_v46 = vld [vmem:[#allocation9 + $0x3a0] sm:$0xff]   ;;  %v4233_v59 = vld [vmem:[#allocation9 + $0x47c] ss:$0 sps:$4 sm:$0xff]  }
 0x5db   : > { %2563 = vmatprep.subr.bf16.mxu0 %v4411_v47  ;;  %3063 = vmatprep.subr.bf16.mxu1 %v4411_v47  ;;  %v2971_v40 = vsel %vm1013_vm13, %v2969_v27, %v2970_v28  ;;  %v3191_v1 = vsel %vm354_vm3, %v4233_v59, 0 }
 0x5dc   : > { %v2978_v44 = vrot.slane %v2958_v37, 1 }
 0x5dd   : > { %2564 = vmatpush1.bf16.msra.mxu0 %v4211_v36  ;;  %v2957_v36 = vpack.c.bf16 %v4979_v11, %v2949_v39  ;;  %v3144_v11 = vld [vmem:[#allocation2 + $0x19] sm:$0xff] }
 0x5de   : > { %3064 = vmatpush1.bf16.msra.mxu1 %v4212_v49  ;;  %2896 = vmatprep.subr.bf16.mxu0 %v4411_v47  ;;  %v2980_v45 = vsel %vm1013_vm13, %v2978_v44, %v2979_v32  ;;  %v2976_v49 = vrot.slane %v2959_v43, 1  ;;  %v3147_v5 = vpack.c.bf16 %v3145_v3, %v3144_v11 }
 0x5df   : > { %3065 = vmatprep.subr.bf16.mxu1 %v4411_v47  ;;  %v2975_v51 = vrot.slane %v2957_v36, 1 }
 0x5e0   : > { %2580 = vmatmul.mubr.bf16.vlgmr.msra.gmra.mrb[36].mxu0 %v2457_v4  ;;  %v3128_v4 = vld [vmem:[#allocation2 + $0x8] sm:$0xff] }
 0x5e1   : > { %3725 = vmatprep.mubr.msk.bf16.mxu0 %vm229_vm0, %v2466_v41  ;;  %2828 = vmatmul.mubr.bf16.gmra.mrb[44].mxu1 %v2694_v8  ;;  %v2977_v54 = vsel %vm1013_vm13, %v2975_v51, %v2976_v49  ;;  %v4235_v41 = vld [vmem:[#allocation9 + $0x440] sm:$0xff]   ;;  %v3131_v8 = vpack.c.bf16 %v3128_v4, %v3127_v7 }
 0x5e2   : > { %2897 = vmatpush1.bf16.msra.mxu0 %v4213_v60  ;;  %3066 = vmatpush1.bf16.msra.mxu1 %v4214_v63  ;;  %v4232_v60 = vld [vmem:[#allocation9 + $0x474] sm:$0xff]   ;;  %v3146_v63 = vpack.c.bf16 %v3143_v57, %v3142_v55 }
 0x5e3   : > { %3758 = vmatprep.mubr.msk.bf16.mxu1 %vm229_vm0, %v2974_v9  ;;  %2898 = vmatprep.subr.bf16.mxu0 %v4411_v47  ;;  %v4236_v9 = vld [vmem:[#allocation9 + $0x448] sm:$0xff]  }
 0x5e4   : > { %3067 = vmatprep.subr.bf16.mxu1 %v4411_v47 }
 0x5e6   : > { %2899 = vmatpush1.bf16.msra.mxu0 %v4215_v10  ;;  %3068 = vmatpush1.bf16.msra.mxu1 %v4216_v13  ;;  %v4237_v10 = vld [vmem:[#allocation9 + $0x450] sm:$0xff]   ;;  %v4238_v13 = vld [vmem:[#allocation9 + $0x458] ss:$0 sps:$4 sm:$0xff]  }
 0x5e7   : > { %2900 = vmatprep.subr.bf16.mxu0 %v4411_v47  ;;  %3069 = vmatprep.subr.bf16.mxu1 %v4411_v47  ;;  %v3276_v17 = vsel %vm354_vm3, %v4238_v13, 0 }
 0x5e8   : > { %2588 = vmatmul.mubr.bf16.gmra.mrb[40].mxu0 %v2463_v61  ;;  %v3129_v61 = vld [vmem:[#allocation2 + $0x18] sm:$0xff] }
 0x5e9   : > { %3747 = vmatprep.mubr.msk.bf16.mxu0 %vm229_vm0, %v2622_v42 }
 0x5ea   : > { %2901 = vmatpush1.bf16.msra.mxu0 %v4217_v0  ;;  %3070 = vmatpush1.bf16.msra.mxu1 %v4218_v18  ;;  %v3130_v0 = vld [vmem:[#allocation2 + $0x20] sm:$0xff]  ;;  %v3328_v18 = vld [vmem:[#allocation2 + $0xa] sm:$0xff] }
 0x5eb   : > { %2902 = vmatprep.subr.bf16.mxu0 %v4411_v47  ;;  %3071 = vmatprep.subr.bf16.mxu1 %v4411_v47  ;;  %v3132_v42 = vpack.c.bf16 %v3130_v0, %v3129_v61  ;;  %v3760_v0 = vld [vmem:[#allocation11 + $0x5] ss:$0 sm:$0xff] }
 0x5ee   : > { %2903 = vmatpush1.bf16.msra.mxu0 %v4219_v6  ;;  %3072 = vmatpush1.bf16.msra.mxu1 %v4220_v19  ;;  %v4240_v6 = vld [vmem:[#allocation9 + $0x488] sm:$0xff]   ;;  %v3331_v19 = vpack.c.bf16 %v3328_v18, %v3327_v15 }
 0x5ef   : > { %2904 = vmatprep.subr.bf16.mxu0 %v4411_v47  ;;  %3073 = vmatprep.subr.bf16.mxu1 %v4411_v47 }
 0x5f2   : > { %2905 = vmatpush1.bf16.msra.mxu0 %v4221_v20  ;;  %3074 = vmatpush1.bf16.msra.mxu1 %v4222_v29  ;;  %v4241_v20 = vld [vmem:[#allocation9 + $0x490] sm:$0xff]   ;;  %v4242_v29 = vld [vmem:[#allocation9 + $0x498] sm:$0xff]  }
 0x5f3   : > { %2906 = vmatprep.subr.bf16.mxu0 %v4411_v47  ;;  %3075 = vmatprep.subr.bf16.mxu1 %v4411_v47 }
 0x5f6   : > { %2907 = vmatpush1.bf16.msra.mxu0 %v4223_v21  ;;  %3076 = vmatpush1.bf16.msra.mxu1 %v4224_v22  ;;  %v3376_v21 = vsel %vm354_vm3, %v4243_v62, 0  ;;  %v3329_v22 = vld [vmem:[#allocation2 + $0x1a] sm:$0xff] }
 0x5f7   : > { %2908 = vmatprep.subr.bf16.mxu0 %v4411_v47  ;;  %3077 = vmatprep.subr.bf16.mxu1 %v4411_v47  ;;  %v3332_v31 = vpack.c.bf16 %v3330_v23, %v3329_v22 }
 0x5fa   : > { %2909 = vmatpush1.bf16.msra.mxu0 %v4225_v26  ;;  %3078 = vmatpush1.bf16.msra.mxu1 %v4226_v35 }
 0x5fb   : > { %2910 = vmatprep.subr.bf16.mxu0 %v4411_v47 }
 0x5fd   : > { %3094 = vmatmul.mubr.bf16.vlgmr.msra.gmra.mrb[48].mxu1 %v2971_v40 }
 0x5fe   : > { %2911 = vmatpush1.bf16.msra.mxu0 %v4227_v34  ;;  %3759 = vmatprep.mubr.msk.bf16.mxu1 %vm229_vm0, %v2980_v45 }
 0x5ff   : > { %2912 = vmatprep.subr.bf16.mxu0 %v4411_v47  ;;  %v4231_v47 = vld [vmem:[#allocation9 + $0x46c] sm:$0xff]  }
 0x602   : > { %2913 = vmatpush1.bf16.msra.mxu0 %v4228_v46 }
 0x603   : > { %3940 = vmatprep.subr.bf16.mxu0 %v4229_v48 }
 0x605   : > { %2929 = vmatmul.mubr.bf16.vlgmr.msra.gmra.mrb[44].mxu0 %v2621_v16  ;;  %3102 = vmatmul.mubr.bf16.gmra.mrb[52].mxu1 %v2977_v54 }
 0x606   : > { %3748 = vmatprep.mubr.msk.bf16.mxu0 %vm229_vm0, %v2624_v53  ;;  %3941 = vmatpush3.bf16.msra.mxu0 %v4229_v48 }
 0x607   : > { %3942 = vmatprep.subr.bf16.mxu0 %v4230_v52 }
 0x60a   : > { %3943 = vmatpush3.bf16.msra.mxu0 %v4230_v52 }
 0x60b   : > { %3944 = vmatprep.subr.bf16.mxu0 %v4231_v47 }
 0x60d   : > { %2937 = vmatmul.mubr.bf16.gmra.mrb[48].mxu0 %v2623_v58 }
 0x60e   : > { %3945 = vmatpush3.bf16.msra.mxu0 %v4231_v47  ;;  %3950 = vmatprep.mubr.msk.bf16.mxu0 %vm220_vm1, %v3146_v63 }
 0x60f   : > { %3946 = vmatprep.subr.bf16.mxu0 %v4232_v60 }
 0x612   : > { %3947 = vmatpush3.bf16.msra.mxu0 %v4232_v60 }
 0x613   : > { %4012 = vmatprep.subr.msk.bf16.mxu0 %vm354_vm3, %v4233_v59 }
 0x616   : > { %3949 = vmatpush3.bf16.msra.mxu0 %v3191_v1 }
 0x617   : > { %3954 = vmatprep.subr.bf16.mxu0 %v4234_v2 }
 0x619   : > { %3951 = vmatmul.mubr.msk.bf16.vlgmr.msra.gmra.mrb[52].mxu0 %vm220_vm1, %v3147_v5 }
 0x61a   : > { %3955 = vmatpush3.bf16.msra.mxu0 %v4234_v2  ;;  %3964 = vmatprep.mubr.msk.bf16.mxu0 %vm220_vm1, %v3131_v8  ;;  %v3726_v8 = vld [vmem:[#allocation11 + $0x4] ss:$0 sm:$0xff] }
 0x61b   : > { %3956 = vmatprep.subr.bf16.mxu0 %v4235_v41 }
 0x61e   : > { %3957 = vmatpush3.bf16.msra.mxu0 %v4235_v41 }
 0x61f   : > { %3958 = vmatprep.subr.bf16.mxu0 %v4236_v9 }
 0x622   : > { %3959 = vmatpush3.bf16.msra.mxu0 %v4236_v9 }
 0x623   : > { %3960 = vmatprep.subr.bf16.mxu0 %v4237_v10 }
 0x626   : > { %3961 = vmatpush3.bf16.msra.mxu0 %v4237_v10 }
 0x627   : > { %4013 = vmatprep.subr.msk.bf16.mxu0 %vm354_vm3, %v4238_v13 }
 0x62a   : > { %3963 = vmatpush3.bf16.msra.mxu0 %v3276_v17 }
 0x62b   : > { %3968 = vmatprep.subr.bf16.mxu0 %v4239_v14 }
 0x62d   : > { %3965 = vmatmul.mubr.msk.bf16.vlgmr.msra.gmra.mrb[52].mxu0 %vm220_vm1, %v3132_v42 }
 0x62e   : > { %3969 = vmatpush3.bf16.msra.mxu0 %v4239_v14  ;;  %3978 = vmatprep.mubr.msk.bf16.mxu0 %vm220_vm1, %v3331_v19 }
 0x62f   : > { %3970 = vmatprep.subr.bf16.mxu0 %v4240_v6 }
 0x632   : > { %3971 = vmatpush3.bf16.msra.mxu0 %v4240_v6 }
 0x633   : > { %3972 = vmatprep.subr.bf16.mxu0 %v4241_v20 }
 0x636   : > { %3973 = vmatpush3.bf16.msra.mxu0 %v4241_v20 }
 0x637   : > { %3974 = vmatprep.subr.bf16.mxu0 %v4242_v29 }
 0x63a   : > { %3975 = vmatpush3.bf16.msra.mxu0 %v4242_v29 }
 0x63b   : > { %4014 = vmatprep.subr.msk.bf16.mxu0 %vm354_vm3, %v4243_v62 }
 0x63e   : > { %3977 = vmatpush3.bf16.msra.mxu0 %v3376_v21 }
 0x641   : > { %3979 = vmatmul.mubr.msk.bf16.vlgmr.msra.gmra.mrb[52].mxu0 %vm220_vm1, %v3332_v31 }
 0x688   : > { %v2416_v30 = vpop.f32.mrb[32].mxu1 }
 0x689   : > { %v2418_v25 = vpop.f32.mrb[33].mxu1 }
 0x68a   : > { %v2419_v12 = vpop.f32.mrb[34].mxu1 }
 0x68b   : > { %v2421_v24 = vpop.f32.mrb[35].mxu1 }
 0x68f   : > { %v2307_v26 = vpop.f32.mrb[28].mxu0 }
 0x690   : > { %v2417_v35 = vadd.f32 %v2416_v30, %v2307_v26  ;;  %v2309_v37 = vpop.f32.mrb[29].mxu0  ;;  %v2424_v27 = vpop.f32.mrb[36].mxu1 }
 0x691   : > { %v2310_v28 = vpop.f32.mrb[30].mxu0  ;;  %v2426_v32 = vpop.f32.mrb[37].mxu1 }
 0x692   : > { %v2420_v33 = vadd.f32 %v2419_v12, %v2310_v28  ;;  %v2312_v34 = vpop.f32.mrb[31].mxu0  ;;  %v2427_v44 = vpop.f32.mrb[38].mxu1 }
 0x693   : > { %v2429_v39 = vpop.f32.mrb[39].mxu1 }
 0x697   : > { %v2315_v40 = vpop.f32.mrb[32].mxu0 }
 0x698   : > { %v2425_v43 = vadd.f32 %v2424_v27, %v2315_v40  ;;  %v2317_v45 = vpop.f32.mrb[33].mxu0 }
 0x699   : > { %v2318_v46 = vpop.f32.mrb[34].mxu0 }
 0x69a   : > { %v2428_v36 = vadd.f32 %v2427_v44, %v2318_v46  ;;  %v2320_v48 = vpop.f32.mrb[35].mxu0 }
 0x6ac   : > { %v2821_v49 = vpop.f32.mrb[40].mxu1 }
 0x6ad   : > { %v2823_v50 = vpop.f32.mrb[41].mxu1 }
 0x6ae   : > { %v2824_v38 = vpop.f32.mrb[42].mxu1 }
 0x6af   : > { %v2826_v51 = vpop.f32.mrb[43].mxu1 }
 0x6b3   : > { %v2581_v16 = vpop.f32.mrb[36].mxu0 }
 0x6b4   : > { %v2596_v52 = vadd.f32 %v2581_v16, %v2417_v35  ;;  %v2583_v53 = vpop.f32.mrb[37].mxu0  ;;  %v2829_v54 = vpop.f32.mrb[44].mxu1 }
 0x6b5   : > { %v2584_v47 = vpop.f32.mrb[38].mxu0  ;;  %v2831_v56 = vpop.f32.mrb[45].mxu1 }
 0x6b6   : > { %v2597_v57 = vadd.f32 %v2584_v47, %v2420_v33  ;;  %v2586_v58 = vpop.f32.mrb[39].mxu0  ;;  %v2832_v55 = vpop.f32.mrb[46].mxu1  ;;  %v2605_v61 = vadd.f32 %v3726_v8, %v2596_v52 }
 0x6b7   : > { %v2834_v60 = vpop.f32.mrb[47].mxu1 }
 0x6b8   : > { %v2606_v29 = vadd.f32 %v3726_v8, %v2597_v57  ;;  %v2609_v22 = vmax.f32 %v2605_v61, 0.0 }
 0x6ba   : > { %v2610_v25 = vmax.f32 %v2606_v29, 0.0 }
 0x6bb   : > { %v2589_v63 = vpop.f32.mrb[40].mxu0 }
 0x6bc   : > { %v2598_v59 = vadd.f32 %v2589_v63, %v2425_v43  ;;  %v2591_v1 = vpop.f32.mrb[41].mxu0 }
 0x6bd   : > { %v2592_v2 = vpop.f32.mrb[42].mxu0 }
 0x6be   : > { %v2599_v3 = vadd.f32 %v2592_v2, %v2428_v36  ;;  %v2594_v4 = vpop.f32.mrb[43].mxu0  ;;  %v2607_v27 = vadd.f32 %v3726_v8, %v2598_v59 }
 0x6c0   : > { %v2608_v44 = vadd.f32 %v3726_v8, %v2599_v3  ;;  %v2611_v43 = vmax.f32 %v2607_v27, 0.0 }
 0x6c2   : > { %v2612_v36 = vmax.f32 %v2608_v44, 0.0 }
 0x6d0   : > { %v3095_v11 = vpop.f32.mrb[48].mxu1 }
 0x6d1   : > { %v3097_v5 = vpop.f32.mrb[49].mxu1 }
 0x6d2   : > { %v3098_v7 = vpop.f32.mrb[50].mxu1 }
 0x6d3   : > { %v3100_v41 = vpop.f32.mrb[51].mxu1 }
 0x6d8   : > { %v2930_v9 = vpop.f32.mrb[44].mxu0  ;;  %v3103_v10 = vpop.f32.mrb[52].mxu1 }
 0x6d9   : > { %v2931_v13 = vadd.f32 %v2930_v9, %v2821_v49  ;;  %v2932_v17 = vpop.f32.mrb[45].mxu0  ;;  %v3105_v14 = vpop.f32.mrb[53].mxu1 }
 0x6da   : > { %v2933_v15 = vpop.f32.mrb[46].mxu0  ;;  %v3106_v18 = vpop.f32.mrb[54].mxu1 }
 0x6db   : > { %v3110_v42 = vadd.f32 %v3095_v11, %v2931_v13  ;;  %v2934_v6 = vadd.f32 %v2933_v15, %v2824_v38  ;;  %v2935_v19 = vpop.f32.mrb[47].mxu0  ;;  %v3108_v20 = vpop.f32.mrb[55].mxu1  ;;  %v3782_v38 = vld [vmem:[#allocation11 + $0x6] ss:$0 sm:$0xff] }
 0x6dd   : > { %v3119_v62 = vadd.f32 %v3760_v0, %v3110_v42  ;;  %v3111_v21 = vadd.f32 %v3098_v7, %v2934_v6 }
 0x6df   : > { %v3123_v23 = vmax.f32 %v3119_v62, 0.0  ;;  %v3120_v31 = vadd.f32 %v3760_v0, %v3111_v21 }
 0x6e0   : > { %v2938_v30 = vpop.f32.mrb[48].mxu0 }
 0x6e1   : > { %v3124_v12 = vmax.f32 %v3120_v31, 0.0  ;;  %v2939_v24 = vadd.f32 %v2938_v30, %v2829_v54  ;;  %v2940_v26 = vpop.f32.mrb[49].mxu0  ;;  %v3444_v35 = vadd.f32 %v3123_v23, %v2609_v22 }
 0x6e2   : > { %v2941_v37 = vpop.f32.mrb[50].mxu0 }
 0x6e3   : > { %v3112_v28 = vadd.f32 %v3103_v10, %v2939_v24  ;;  %v2942_v32 = vadd.f32 %v2941_v37, %v2832_v55  ;;  %v2943_v33 = vpop.f32.mrb[51].mxu0  ;;  %v3445_v34 = vadd.f32 %v3124_v12, %v2610_v25 }
 0x6e5   : > { %v3121_v39 = vadd.f32 %v3760_v0, %v3112_v28  ;;  %v3113_v40 = vadd.f32 %v3106_v18, %v2942_v32 }
 0x6e7   : > { %v3125_v45 = vmax.f32 %v3121_v39, 0.0  ;;  %v3122_v46 = vadd.f32 %v3760_v0, %v3113_v40 }
 0x6e9   : > { %v3126_v48 = vmax.f32 %v3122_v46, 0.0  ;;  %v3446_v49 = vadd.f32 %v3125_v45, %v2611_v43 }
 0x6eb   : > { %v3447_v50 = vadd.f32 %v3126_v48, %v2612_v36 }
 0x714   : > { %v3980_v51 = vpop.f32.mrb[52].mxu0 }
 0x715   : > { %v3438_v16 = vadd.f32 %v3980_v51, %v3782_v38  ;;  %v3412_v52 = vpop.f32.mrb[53].mxu0 }
 0x716   : > { %v3436_v53 = vadd.f32 %v3782_v38, %v3412_v52  ;;  %v3981_v54 = vpop.f32.mrb[54].mxu0 }
 0x717   : > { %v3442_v47 = vmax.f32 %v3438_v16, 0.0  ;;  %v3439_v56 = vadd.f32 %v3981_v54, %v3782_v38  ;;  %v3415_v57 = vpop.f32.mrb[55].mxu0 }
 0x718   : > { %v3440_v58 = vmax.f32 %v3436_v53, 0.0  ;;  %v3437_v55 = vadd.f32 %v3782_v38, %v3415_v57 }
 0x719   : > { %v3450_v60 = vadd.f32 %v3446_v49, %v3442_v47  ;;  %v3443_v63 = vmax.f32 %v3439_v56, 0.0 }
 0x71a   : > { %v3448_v59 = vadd.f32 %v3444_v35, %v3440_v58  ;;  %v3441_v1 = vmax.f32 %v3437_v55, 0.0 }
 0x71b   : > { %v3454_v2 = vmul.f32 0.33333334, %v3450_v60  ;;  %v3451_v3 = vadd.f32 %v3447_v50, %v3443_v63 }
 0x71c   : > { %v3452_v4 = vmul.f32 0.33333334, %v3448_v59  ;;  %v3449_v11 = vadd.f32 %v3445_v34, %v3441_v1 }
 0x71d   : > { %3458 = vst [vmem:[%s216_s17 + $0x10] sm:$0xff] %v3454_v2  ;;  %v3455_v5 = vmul.f32 0.33333334, %v3451_v3 }
 0x71e   : > { %3456 = vst [vmem:[%s216_s17] sm:$0xff] %v3452_v4  ;;  %v3453_v7 = vmul.f32 0.33333334, %v3449_v11 }
 0x71f   : > { %3459 = vst [vmem:[%s216_s17 + $0x18] sm:$0xff] %v3455_v5 }
 0x720   : > { %3457 = vst [vmem:[%s216_s17 + $0x8] sm:$0xff] %v3453_v7 }
 0x721   : > { %4343 = shalt.err (!%p4340_p2)
}
 0x722   : > { %s4344_s11 = scalar_lea.hbm %s5053_s5, 512  ;;  %s4348_s29 = scalar_lea.hbm %s5101_s3, 1024 }
 0x723   : > { %p4345_p13 = scmp.ne.s32.totalorder %s5053_s5, %s4344_s11  ;;  %p4349_p4 = scmp.lt.u32.totalorder %s5053_s5, %s5101_s3 }
 0x724   : > { %p4350_p5 = scmp.lt.u32.totalorder %s4348_s29, %s4344_s11  ;;  %p4352_p11 = scmp.lt.u32.totalorder %s4344_s11, %s5053_s5 }
 0x725   : > { %p4346_p6 = pnand %p4345_p13, %p5115_p0 }
 0x726   : > { %p4351_p8 = por %p4350_p5, %p4349_p4 }
 0x727   : > { %p4347_p10 = pneg %p4346_p6 }
 0x728   : > { %p4353_p1 = por %p4352_p11, %p4351_p8 }
 0x72a   : > { %p4354_p3 = pnand %p4353_p1, %p4347_p10 }
 0x72c   : > { %4357 = shalt.err (!%p4354_p3)
}
 0x72d   : > { %s4414_s17 = smov 128  }
 0x72e   : > { %4025 = dma.vmem_to_hbm [thread:$0]  (%p5115_p0), %s5048_s24, 512, %s5053_s5, %s3461_s8, %s4414_s17, %s4414_s17, %s4412_s20  }
 0x72f PF: > { %s3490_s26 = sand.u32 1, %s4388_s12   ;;  %p5116_p7 = scmp.ne.s32.totalorder %s5106_s19, 0 }
 0x730   : > { %p5117_p9 = scmp.ge.s32.totalorder %s4400_s15, 2  ;;  %s3491_s27 = scalar_lea.sflag [#allocation8], %s3490_s26 }
 0x732   : > { %p4039_p12 = pnand %p5117_p9, %p5116_p7 }
 0x734   : > { %4383 = dma.done.wait (!%p4039_p12), %s3491_s27, 512  }
 0x735   : > { %4385 = vsyncadd (!%p4039_p12), %s3491_s27, 4294966784  ;;  %p17_p2 = scmp.ge.s32.totalorder %s4545_s4, 4   ;;  %s5118_s12 = smov %s4392_s13 }
 0x736   : > { %s5119_s13 = smov %s4396_s14  ;;  %s5120_s14 = smov %s4561_s7 }
 0x737   : > { %s5121_s15 = smov %s4545_s4  ;;  %19 = sbr.rel (!%p17_p2) target bundleno = 6 (0x6), region = 85 }
 0x73e   :  { %3496 = vsyncpa [#allocation7], 1 }
 0x73f   :  { %3498 = vsyncpa [#allocation7 + $0x1], 1 }
 0x740   :  { %3499 = vsyncpa [#allocation10], 1 }
 0x741   :  { %3500 = vsyncpa [#allocation8], 1 }
 0x742   :  { %3502 = vsyncpa [#allocation8 + $0x1], 1 }

</bundles_post_ra>
